<compile_context>
chip_gen: v5e
topology: v5e:2x2
jax: 0.10.0
libtpu: 0.0.40
codegen_flags: <defaults>
</compile_context>

<pallas_src>
import functools
import math

import jax
import jax.numpy as jnp
from jax.experimental import pallas as pl
from jax.experimental.pallas import tpu as pltpu

# Keys in the same (insertion) order as the PyTorch module's self.input_dims.
KEYS = ("a", "d", "p", "u", "x")


def _round_up(n, m):
    return ((n + m - 1) // m) * m


# ---------------------------------------------------------------------------
# Kernel: entire forward pass = 4 lane-dense matmuls + 3 ReLUs.
# ---------------------------------------------------------------------------
def glnet_mlp_kernel(x_ref, w1_ref, b1_ref, w2_ref, b2_ref,
                     wf1_ref, bf1_ref, wf2_ref, bf2_ref, out_ref,
                     *, compute_dtype):
    cd = compute_dtype

    x = x_ref[...].astype(cd)

    # Block-diagonal "per-key" layer 1:  [tb, D_pad] @ [D_pad, I_pad]
    h = jnp.dot(x, w1_ref[...].astype(cd), preferred_element_type=jnp.float32)
    h = jnp.maximum(h + b1_ref[...], 0.0)

    # Block-diagonal "per-key" layer 2:  [tb, I_pad] @ [I_pad, Hc_pad]
    h = jnp.dot(h.astype(cd), w2_ref[...].astype(cd),
                preferred_element_type=jnp.float32)
    h = jnp.maximum(h + b2_ref[...], 0.0)

    # fc head layer 1 (implicit concat already baked into Hc layout)
    h = jnp.dot(h.astype(cd), wf1_ref[...].astype(cd),
                preferred_element_type=jnp.float32)
    h = jnp.maximum(h + bf1_ref[...], 0.0)

    # fc head layer 2 (lane-dense padded output)
    out = jnp.dot(h.astype(cd), wf2_ref[...].astype(cd),
                  preferred_element_type=jnp.float32) + bf2_ref[...]
    out_ref[...] = out.astype(out_ref.dtype)


# ---------------------------------------------------------------------------
# One-time host-side packing: block-diagonal, 128-lane-padded weights.
# ---------------------------------------------------------------------------
def pack_params(params, input_dims, input_layers_out_dim, fc_out_dim,
                output_dim):
    H = input_layers_out_dim
    inter = 2 * H
    n = len(KEYS)
    dims = [input_dims[k] for k in KEYS]

    d_total = sum(dims)
    d_pad = _round_up(d_total, 128)          # concatenated input lanes
    i_pad = _round_up(n * inter, 128)        # concatenated intermediate lanes
    hc_pad = _round_up(n * H, 128)           # concatenated per-key output lanes
    f_pad = _round_up(fc_out_dim, 128)       # fc hidden lanes
    o_pad = _round_up(output_dim, 128)       # output lanes (lane-dense store)

    w1 = jnp.zeros((d_pad, i_pad), jnp.float32)
    b1 = jnp.zeros((1, i_pad), jnp.float32)
    w2 = jnp.zeros((i_pad, hc_pad), jnp.float32)
    b2 = jnp.zeros((1, hc_pad), jnp.float32)

    off = 0
    for idx, (k, dim) in enumerate(zip(KEYS, dims)):
        w1 = w1.at[off:off + dim,
                   idx * inter:(idx + 1) * inter].set(params[f"W1_{k}"])
        b1 = b1.at[:, idx * inter:(idx + 1) * inter].set(params[f"b1_{k}"])
        w2 = w2.at[idx * inter:(idx + 1) * inter,
                   idx * H:(idx + 1) * H].set(params[f"W2_{k}"])
        b2 = b2.at[:, idx * H:(idx + 1) * H].set(params[f"b2_{k}"])
        off += dim

    wf1 = jnp.zeros((hc_pad, f_pad), jnp.float32)
    wf1 = wf1.at[:n * H, :fc_out_dim].set(params["Wf1"])
    bf1 = jnp.zeros((1, f_pad), jnp.float32).at[:, :fc_out_dim].set(params["bf1"])
    wf2 = jnp.zeros((f_pad, o_pad), jnp.float32)
    wf2 = wf2.at[:fc_out_dim, :output_dim].set(params["Wf2"])
    bf2 = jnp.zeros((1, o_pad), jnp.float32).at[:, :output_dim].set(params["bf2"])

    return {
        "W1": w1, "b1": b1, "W2": w2, "b2": b2,
        "Wf1": wf1, "bf1": bf1, "Wf2": wf2, "bf2": bf2,
        "d_total": d_total, "d_pad": d_pad,
        "output_dim": output_dim, "o_pad": o_pad,
    }


# ---------------------------------------------------------------------------
# Wrapper
# ---------------------------------------------------------------------------
def _pick_batch_tile(B):
    # Biggest power-of-two tile <= 512 that divides B (f32, tiny per-row work).
    for cand in (512, 256, 128, 64, 32, 16, 8):
        if B >= cand and B % cand == 0:
            return cand
    return B


def glnet_mlp_forward(inputs, packed, *, batch_tile=None,
                      compute_dtype=jnp.float32):
    """inputs: dict key -> [B, dim_k] f32; packed: output of pack_params."""
    # Single lane-dense input slab: concat per-key inputs, zero-pad to D_pad.
    x = jnp.concatenate([inputs[k] for k in KEYS], axis=1)
    B = x.shape[0]
    d_total, d_pad = packed["d_total"], packed["d_pad"]
    if d_pad != d_total:
        x = jnp.pad(x, ((0, 0), (0, d_pad - d_total)))

    tb = batch_tile if batch_tile is not None else _pick_batch_tile(B)
    assert B % tb == 0, "batch tile must divide batch"
    grid = (B // tb,)

    o_pad = packed["o_pad"]
    weight_names = ("W1", "b1", "W2", "b2", "Wf1", "bf1", "Wf2", "bf2")
    weights = [packed[name] for name in weight_names]

    in_specs = [pl.BlockSpec((tb, d_pad), lambda i: (i, 0))]
    # Weights/biases: whole array, grid-invariant block index.
    in_specs += [pl.BlockSpec(w.shape, lambda i: (0, 0)) for w in weights]
    out_spec = pl.BlockSpec((tb, o_pad), lambda i: (i, 0))

    kernel = functools.partial(glnet_mlp_kernel, compute_dtype=compute_dtype)

    out_padded = pl.pallas_call(
        kernel,
        out_shape=jax.ShapeDtypeStruct((B, o_pad), jnp.float32),
        grid_spec=pltpu.PrefetchScalarGridSpec(
            num_scalar_prefetch=0,
            grid=grid,
            in_specs=in_specs,
            out_specs=out_spec,
        ),
        compiler_params=pltpu.CompilerParams(
            dimension_semantics=("parallel",)),
    )(x, *weights)

    # Slice the lane padding back off outside the kernel.
    return out_padded[:, :packed["output_dim"]]


# ---------------------------------------------------------------------------
# Deterministic parameter init (kaiming_uniform_ with relu gain, zero biases,
# matching the module's init_weights).  Weights stored [in, out].
# ---------------------------------------------------------------------------
def kaiming_uniform(key, fan_in, fan_out):
    bound = math.sqrt(6.0 / fan_in)   # gain(relu)=sqrt(2); bound=sqrt(3)*gain/sqrt(fan_in)
    return jax.random.uniform(key, (fan_in, fan_out), jnp.float32,
                              minval=-bound, maxval=bound)


def init_params(key, input_dims, input_layers_out_dim, fc_out_dim, output_dim):
    inter = 2 * input_layers_out_dim
    params = {}
    for k in KEYS:
        dim = input_dims[k]
        key, k1, k2 = jax.random.split(key, 3)
        params[f"W1_{k}"] = kaiming_uniform(k1, dim, inter)
        params[f"b1_{k}"] = jnp.zeros((1, inter), jnp.float32)
        params[f"W2_{k}"] = kaiming_uniform(k2, inter, input_layers_out_dim)
        params[f"b2_{k}"] = jnp.zeros((1, input_layers_out_dim), jnp.float32)
    total_in = input_layers_out_dim * len(KEYS)
    key, k1, k2 = jax.random.split(key, 3)
    params["Wf1"] = kaiming_uniform(k1, total_in, fc_out_dim)
    params["bf1"] = jnp.zeros((1, fc_out_dim), jnp.float32)
    params["Wf2"] = kaiming_uniform(k2, fc_out_dim, output_dim)
    params["bf2"] = jnp.zeros((1, output_dim), jnp.float32)
    return params


# ---------------------------------------------------------------------------
# Pure-JAX reference (mirrors the PyTorch forward exactly, unpacked weights)
# ---------------------------------------------------------------------------
def reference_forward(inputs, params):
    processed = []
    for k in KEYS:
        h = jnp.maximum(inputs[k] @ params[f"W1_{k}"] + params[f"b1_{k}"], 0.0)
        h = jnp.maximum(h @ params[f"W2_{k}"] + params[f"b2_{k}"], 0.0)
        processed.append(h)
    combined = jnp.concatenate(processed, axis=1)
    h = jnp.maximum(combined @ params["Wf1"] + params["bf1"], 0.0)
    return h @ params["Wf2"] + params["bf2"]


# ---------------------------------------------------------------------------
if __name__ == "__main__":
    # Small, module-consistent sizes (Optional dims reduced for experimentation)
    input_dims = {"a": 29, "d": 10, "p": 26, "u": 11, "x": 25}
    input_layers_out_dim = 32
    fc_out_dim = 32
    output_dim = 25
    batch = 256
    batch_tile = 128   # grid=(2,): exercises pipelining + megacore sharding

    key = jax.random.PRNGKey(0)
    key, pkey = jax.random.split(key)
    params = init_params(pkey, input_dims, input_layers_out_dim,
                         fc_out_dim, output_dim)
    packed = pack_params(params, input_dims, input_layers_out_dim,
                         fc_out_dim, output_dim)

    inputs = {}
    for k in KEYS:
        key, sub = jax.random.split(key)
        inputs[k] = jax.random.normal(sub, (batch, input_dims[k]), jnp.float32)

    out = glnet_mlp_forward(inputs, packed, batch_tile=batch_tile)
    out = jax.block_until_ready(out)

    ref = reference_forward(inputs, params)
    assert out.shape == (batch, output_dim), out.shape
    max_err = float(jnp.max(jnp.abs(out - ref)))
    assert jnp.allclose(out, ref, atol=1e-3, rtol=1e-3), (
        f"max abs err {max_err}")

    print("KERNEL_OK")
</pallas_src>

<mosaic_0001>
module attributes {stable_mosaic.version = 11 : i64} {
  func.func @glnet_mlp_kernel(%arg0: i32, %arg1: memref<128x128xf32, #tpu.memory_space<vmem>>, %arg2: memref<128x384xf32, #tpu.memory_space<vmem>>, %arg3: memref<1x384xf32, #tpu.memory_space<vmem>>, %arg4: memref<384x256xf32, #tpu.memory_space<vmem>>, %arg5: memref<1x256xf32, #tpu.memory_space<vmem>>, %arg6: memref<256x128xf32, #tpu.memory_space<vmem>>, %arg7: memref<1x128xf32, #tpu.memory_space<vmem>>, %arg8: memref<128x128xf32, #tpu.memory_space<vmem>>, %arg9: memref<1x128xf32, #tpu.memory_space<vmem>>, %arg10: memref<128x128xf32, #tpu.memory_space<vmem>>) attributes {dimension_semantics = [#tpu.dimension_semantics<parallel>], iteration_bounds = array<i64: 2>, scalar_prefetch = 0 : i64, scratch_operands = 0 : i64, tpu.core_type = #tpu.core_type<tc>, window_params = [{transform_indices = @transform_0, window_bounds = array<i64: 128, 128>}, {pipeline_mode = #tpu.pipeline_mode<synchronous>, transform_indices = @transform_1, window_bounds = array<i64: 128, 384>}, {pipeline_mode = #tpu.pipeline_mode<synchronous>, transform_indices = @transform_2, window_bounds = array<i64: 1, 384>}, {pipeline_mode = #tpu.pipeline_mode<synchronous>, transform_indices = @transform_3, window_bounds = array<i64: 384, 256>}, {pipeline_mode = #tpu.pipeline_mode<synchronous>, transform_indices = @transform_4, window_bounds = array<i64: 1, 256>}, {pipeline_mode = #tpu.pipeline_mode<synchronous>, transform_indices = @transform_5, window_bounds = array<i64: 256, 128>}, {pipeline_mode = #tpu.pipeline_mode<synchronous>, transform_indices = @transform_6, window_bounds = array<i64: 1, 128>}, {pipeline_mode = #tpu.pipeline_mode<synchronous>, transform_indices = @transform_7, window_bounds = array<i64: 128, 128>}, {pipeline_mode = #tpu.pipeline_mode<synchronous>, transform_indices = @transform_8, window_bounds = array<i64: 1, 128>}, {transform_indices = @transform_9, window_bounds = array<i64: 128, 128>}]} {
    %c0 = arith.constant 0 : index
    %c0_0 = arith.constant 0 : index
    %0 = vector.load %arg1[%c0, %c0_0] : memref<128x128xf32, #tpu.memory_space<vmem>>, vector<128x128xf32>
    %c0_1 = arith.constant 0 : index
    %c0_2 = arith.constant 0 : index
    %1 = vector.load %arg2[%c0_1, %c0_2] : memref<128x384xf32, #tpu.memory_space<vmem>>, vector<128x384xf32>
    %cst = arith.constant dense<0.000000e+00> : vector<128x384xf32>
    %2 = tpu.matmul %0, %1, %cst {dimension_numbers = #tpu.dot_dimension_numbers<[1], [0], [0], [1], [0, 0, 1, 1], [], []>} : vector<128x128xf32>, vector<128x384xf32>, vector<128x384xf32> -> vector<128x384xf32>
    %c0_3 = arith.constant 0 : index
    %c0_4 = arith.constant 0 : index
    %3 = vector.load %arg3[%c0_3, %c0_4] : memref<1x384xf32, #tpu.memory_space<vmem>>, vector<1x384xf32>
    %4 = vector.broadcast %3 : vector<1x384xf32> to vector<128x384xf32>
    %5 = arith.addf %2, %4 : vector<128x384xf32>
    %cst_5 = arith.constant 0.000000e+00 : f32
    %6 = vector.broadcast %cst_5 : f32 to vector<128x384xf32>
    %7 = arith.maximumf %5, %6 : vector<128x384xf32>
    %c0_6 = arith.constant 0 : index
    %c0_7 = arith.constant 0 : index
    %8 = vector.load %arg4[%c0_6, %c0_7] : memref<384x256xf32, #tpu.memory_space<vmem>>, vector<384x256xf32>
    %cst_8 = arith.constant dense<0.000000e+00> : vector<128x256xf32>
    %9 = tpu.matmul %7, %8, %cst_8 {dimension_numbers = #tpu.dot_dimension_numbers<[1], [0], [0], [1], [0, 0, 1, 1], [], []>} : vector<128x384xf32>, vector<384x256xf32>, vector<128x256xf32> -> vector<128x256xf32>
    %c0_9 = arith.constant 0 : index
    %c0_10 = arith.constant 0 : index
    %10 = vector.load %arg5[%c0_9, %c0_10] : memref<1x256xf32, #tpu.memory_space<vmem>>, vector<1x256xf32>
    %11 = vector.broadcast %10 : vector<1x256xf32> to vector<128x256xf32>
    %12 = arith.addf %9, %11 : vector<128x256xf32>
    %cst_11 = arith.constant 0.000000e+00 : f32
    %13 = vector.broadcast %cst_11 : f32 to vector<128x256xf32>
    %14 = arith.maximumf %12, %13 : vector<128x256xf32>
    %c0_12 = arith.constant 0 : index
    %c0_13 = arith.constant 0 : index
    %15 = vector.load %arg6[%c0_12, %c0_13] : memref<256x128xf32, #tpu.memory_space<vmem>>, vector<256x128xf32>
    %cst_14 = arith.constant dense<0.000000e+00> : vector<128x128xf32>
    %16 = tpu.matmul %14, %15, %cst_14 {dimension_numbers = #tpu.dot_dimension_numbers<[1], [0], [0], [1], [0, 0, 1, 1], [], []>} : vector<128x256xf32>, vector<256x128xf32>, vector<128x128xf32> -> vector<128x128xf32>
    %c0_15 = arith.constant 0 : index
    %c0_16 = arith.constant 0 : index
    %17 = vector.load %arg7[%c0_15, %c0_16] : memref<1x128xf32, #tpu.memory_space<vmem>>, vector<1x128xf32>
    %18 = vector.broadcast %17 : vector<1x128xf32> to vector<128x128xf32>
    %19 = arith.addf %16, %18 : vector<128x128xf32>
    %cst_17 = arith.constant 0.000000e+00 : f32
    %20 = vector.broadcast %cst_17 : f32 to vector<128x128xf32>
    %21 = arith.maximumf %19, %20 : vector<128x128xf32>
    %c0_18 = arith.constant 0 : index
    %c0_19 = arith.constant 0 : index
    %22 = vector.load %arg8[%c0_18, %c0_19] : memref<128x128xf32, #tpu.memory_space<vmem>>, vector<128x128xf32>
    %cst_20 = arith.constant dense<0.000000e+00> : vector<128x128xf32>
    %23 = tpu.matmul %21, %22, %cst_20 {dimension_numbers = #tpu.dot_dimension_numbers<[1], [0], [0], [1], [0, 0, 1, 1], [], []>} : vector<128x128xf32>, vector<128x128xf32>, vector<128x128xf32> -> vector<128x128xf32>
    %c0_21 = arith.constant 0 : index
    %c0_22 = arith.constant 0 : index
    %24 = vector.load %arg9[%c0_21, %c0_22] : memref<1x128xf32, #tpu.memory_space<vmem>>, vector<1x128xf32>
    %25 = vector.broadcast %24 : vector<1x128xf32> to vector<128x128xf32>
    %26 = arith.addf %23, %25 : vector<128x128xf32>
    %c0_23 = arith.constant 0 : index
    %c0_24 = arith.constant 0 : index
    %27 = vector.load %arg10[%c0_23, %c0_24] : memref<128x128xf32, #tpu.memory_space<vmem>>, vector<128x128xf32>
    tpu.vector_store %arg10[%c0_23, %c0_24], %26 {strides = array<i32>} : memref<128x128xf32, #tpu.memory_space<vmem>>, vector<128x128xf32>,
    return
  }
  func.func @transform_0(%arg0: i32) -> (i32, i32) {
    %c0_i32 = arith.constant 0 : i32
    %c0_i32_0 = arith.constant 0 : i32
    return %arg0, %c0_i32 : i32, i32
  }
  func.func @transform_1(%arg0: i32) -> (i32, i32) {
    %c0_i32 = arith.constant 0 : i32
    %c0_i32_0 = arith.constant 0 : i32
    %c0_i32_1 = arith.constant 0 : i32
    return %c0_i32, %c0_i32_0 : i32, i32
  }
  func.func @transform_2(%arg0: i32) -> (i32, i32) {
    %c0_i32 = arith.constant 0 : i32
    %c0_i32_0 = arith.constant 0 : i32
    %c0_i32_1 = arith.constant 0 : i32
    return %c0_i32, %c0_i32_0 : i32, i32
  }
  func.func @transform_3(%arg0: i32) -> (i32, i32) {
    %c0_i32 = arith.constant 0 : i32
    %c0_i32_0 = arith.constant 0 : i32
    %c0_i32_1 = arith.constant 0 : i32
    return %c0_i32, %c0_i32_0 : i32, i32
  }
  func.func @transform_4(%arg0: i32) -> (i32, i32) {
    %c0_i32 = arith.constant 0 : i32
    %c0_i32_0 = arith.constant 0 : i32
    %c0_i32_1 = arith.constant 0 : i32
    return %c0_i32, %c0_i32_0 : i32, i32
  }
  func.func @transform_5(%arg0: i32) -> (i32, i32) {
    %c0_i32 = arith.constant 0 : i32
    %c0_i32_0 = arith.constant 0 : i32
    %c0_i32_1 = arith.constant 0 : i32
    return %c0_i32, %c0_i32_0 : i32, i32
  }
  func.func @transform_6(%arg0: i32) -> (i32, i32) {
    %c0_i32 = arith.constant 0 : i32
    %c0_i32_0 = arith.constant 0 : i32
    %c0_i32_1 = arith.constant 0 : i32
    return %c0_i32, %c0_i32_0 : i32, i32
  }
  func.func @transform_7(%arg0: i32) -> (i32, i32) {
    %c0_i32 = arith.constant 0 : i32
    %c0_i32_0 = arith.constant 0 : i32
    %c0_i32_1 = arith.constant 0 : i32
    return %c0_i32, %c0_i32_0 : i32, i32
  }
  func.func @transform_8(%arg0: i32) -> (i32, i32) {
    %c0_i32 = arith.constant 0 : i32
    %c0_i32_0 = arith.constant 0 : i32
    %c0_i32_1 = arith.constant 0 : i32
    return %c0_i32, %c0_i32_0 : i32, i32
  }
  func.func @transform_9(%arg0: i32) -> (i32, i32) {
    %c0_i32 = arith.constant 0 : i32
    %c0_i32_0 = arith.constant 0 : i32
    return %arg0, %c0_i32 : i32, i32
  }
}

</mosaic_0001>

<bundles_post_ra>
// kernel: tpu_custom_call.1
= control target key start
LH: loop header
LB: loop body
LE: loop exit
PB: predicated region body
PF: predicated region fallthrough
CT: control target
= control target key end

     0   :  { %s2716_s0 = inlined_call_operand.hbm [shape: f32[256,128], index: 0, kind: input, shape index: {}]   ;;  %s2717_s1 = inlined_call_operand.hbm [shape: f32[128,384], index: 1, kind: input, shape index: {}]   ;;  %s2718_s2 = inlined_call_operand.hbm [shape: f32[1,384], index: 2, kind: input, shape index: {}]   ;;  %s2719_s3 = inlined_call_operand.hbm [shape: f32[384,256], index: 3, kind: input, shape index: {}]   ;;  %s2720_s4 = inlined_call_operand.vmem [shape: f32[1,256], index: 4, kind: input, shape index: {}]   ;;  %s2721_s5 = inlined_call_operand.hbm [shape: f32[256,128], index: 5, kind: input, shape index: {}]   ;;  %s2722_s6 = inlined_call_operand.vmem [shape: f32[1,128], index: 6, kind: input, shape index: {}]   ;;  %s2723_s7 = inlined_call_operand.hbm [shape: f32[128,128], index: 7, kind: input, shape index: {}]   ;;  %s2724_s8 = inlined_call_operand.vmem [shape: f32[1,128], index: 8, kind: input, shape index: {}]   ;;  %s2725_s9 = inlined_call_operand.hbm [shape: f32[256,128], index: 9, kind: output, shape index: {}]  }
   0x1   :  { %2740 = sst [smem:[#allocation19_spill]] %s2717_s1 }
   0x2   :  { %2741 = sst [smem:[#allocation20_spill]] %s2718_s2 }
   0x3   :  { %2742 = sst [smem:[#allocation21_spill]] %s2719_s3 }
   0x4   :  { %14 = vsyncpa [#allocation3], 0 }
   0x5   :  { %16 = vsyncpa [#allocation3 + $0x1], 0 }
   0x6   :  { %17 = vsyncpa [#allocation6], 0 }
   0x7   :  { %18 = vsyncpa [#allocation9], 0 }
   0x8   :  { %19 = vsyncpa [#allocation12], 0 }
   0x9   :  { %20 = vsyncpa [#allocation4], 0 }
   0xa   :  { %22 = vsyncpa [#allocation4 + $0x1], 0  ;;  %s2151_s30 = smov 0   ;;  %s2153_s10 = smov 0  }
   0xb   :  { %s2155_s11 = smov 0   ;;  %s2157_s12 = smov 0  }
   0xc LB: > { %s2743_s1 = sld [smem:[#allocation19_spill]]  ;;  %s2175_s16 = sadd.s32 4294967295, %s2086_s12   ;;  %s2086_s12 = sphi %s2157_s12, %s2770_s12   ;;  %s2082_s11 = sphi %s2155_s11, %s2769_s11   ;;  %s2078_s10 = sphi %s2153_s10, %s2768_s10   ;;  %s2074_s30 = sphi %s2151_s30, %s2767_s30  }
   0xd   : > { %p1696_p0 = scmp.ge.s32.totalorder %s2086_s12, 1  ;;  %p49_p1 = scmp.eq.s32.totalorder %s2175_s16, 0 }
   0xe   : > { %p253_p2 = scmp.lt.s32.totalorder %s2086_s12, 3  ;;  %s2088_s18 = smov [#allocation5]  }
   0xf   : > { %s266_s19 = sshll.u32 %s2088_s18, 4  ;;  %s2745_s3 = sld [smem:[#allocation21_spill]]  ;;  %s267_s19 = int_to_ptr.vmem [resolvable:$true] %s266_s19 }
  0x10   : > { %p2180_p3 = pnand %p1696_p0, %p253_p2  ;;  %s2089_s24 = smov [#allocation8]  }
  0x11   : > { %s292_s25 = sshll.u32 %s2089_s24, 4  ;;  %s2090_s26 = smov 384   ;;  %s293_s25 = int_to_ptr.vmem [resolvable:$true] %s292_s25 }
  0x12   : > { %s264_s15 = sshll.u32 %s2743_s1, 4  ;;  %p1745_p4 = pneg %p2180_p3  ;;  %s265_s15 = int_to_ptr.hbm [resolvable:$true] %s264_s15 }
  0x13   : > { %s2091_s27 = smov 24   ;;  %s2092_s28 = smov 256  }
  0x14   : > { %p2192_p6 = pnand %p1745_p4, %p49_p1  ;;  %s2093_s29 = smov 16  }
  0x15   : > { %s290_s22 = sshll.u32 %s2745_s3, 4  ;;  %s2747_s2 = sld [smem:[#allocation20_spill]]  ;;  %s291_s22 = int_to_ptr.hbm [resolvable:$true] %s290_s22 }
  0x16   : > { %1748 = dma.hbm_to_vmem [thread:$0]  (!%p2192_p6), %s265_s15, 6144, %s267_s19, [#allocation6], %s2090_s26, %s2090_s26, %s2091_s27  }
  0x17   : > { %1754 = dma.hbm_to_vmem [thread:$0]  (!%p2192_p6), %s291_s22, 12288, %s293_s25, [#allocation9], %s2092_s28, %s2092_s28, %s2093_s29  }
  0x18   : > { %s2094_s20 = smov [#allocation7]   ;;  %s307_s15 = sshll.u32 %s2721_s5, 4  ;;  %s308_s15 = int_to_ptr.hbm [resolvable:$true] %s307_s15 }
  0x19   : > { %s281_s21 = sshll.u32 %s2094_s20, 4  ;;  %s2095_s19 = smov [#allocation10]   ;;  %s282_s21 = int_to_ptr.vmem [resolvable:$true] %s281_s21 }
  0x1a   : > { %s309_s22 = sshll.u32 %s2095_s19, 4  ;;  %s2726_s25 = smov 128   ;;  %s310_s22 = int_to_ptr.vmem [resolvable:$true] %s309_s22 }
  0x1b   : > { %s279_s18 = sshll.u32 %s2747_s2, 4  ;;  %s2727_s26 = smov 8   ;;  %s280_s18 = int_to_ptr.hbm [resolvable:$true] %s279_s18 }
  0x1c   : > { %1751 = dma.hbm_to_vmem [thread:$0]  (!%p2192_p6), %s280_s18, 48, %s282_s21, [#allocation6]  }
  0x1d   : > { %1757 = dma.hbm_to_vmem [thread:$0]  (!%p2192_p6), %s308_s15, 4096, %s310_s22, [#allocation9], %s2726_s25, %s2726_s25, %s2727_s26  }
  0x1e   : > { %s324_s28 = sshll.u32 %s2723_s7, 4  ;;  %s2098_s29 = smov [#allocation11]   ;;  %s325_s28 = int_to_ptr.hbm [resolvable:$true] %s324_s28 }
  0x1f   : > { %s326_s13 = sshll.u32 %s2098_s29, 4  ;;  %s1695_s14 = sadd.s32 4294967294, %s2086_s12   ;;  %s327_s13 = int_to_ptr.vmem [resolvable:$true] %s326_s13 }
  0x20   : > { %1760 = dma.hbm_to_vmem [thread:$0]  (!%p2192_p6), %s325_s28, 2048, %s327_s13, [#allocation12], %s2726_s25, %s2726_s25, %s2727_s26  }
  0x21   : > { %s2223_s18 = sadd.s32 1, %s2086_s12   ;;  %s35_s20 = sadd.s32 1, %s2082_s11 }
  0x22   : > { %s32_s21 = ssub.s32 %s2086_s12, %s2223_s18  ;;  %p42_p7 = scmp.ne.s32.totalorder %s2082_s11, %s2078_s10 }
  0x23   : > { %p33_p8 = scmp.eq.s32.totalorder %s32_s21, 0  ;;  %p43_p9 = scmp.eq.s32.totalorder %s2086_s12, 0 }
  0x24   : > { %p48_p10 = scmp.ne.s32.totalorder %s2078_s10, %s2074_s30  ;;  %p240_p11 = scmp.eq.s32.totalorder %s2175_s16, 1 }
  0x25   : > { %s2235_s24 = scalar_select %p33_p8, %s2082_s11, %s35_s20  }
  0x26   : > { %p2239_p12 = por %p49_p1, %p48_p10  ;;  %p2243_p13 = por %p240_p11, %p42_p7 }
  0x27   : > { %p246_p0 = scmp.eq.s32.totalorder %s1695_s14, 1  ;;  %p44_p2 = por %p43_p9, %p42_p7 }
  0x28   : > { %s343_s19 = sand.u32 1, %s2082_s11   ;;  %p1774_p6 = scmp.lt.s32.totalorder %s2086_s12, 2 }
  0x29   : > { %p2248_p4 = por %p246_p0, %p48_p10  ;;  %s1703_s1 = sshll.u32 %s343_s19, 7 }
  0x2a   : > { %s1719_s27 = sshll.u32 %s2086_s12, 7  ;;  %s347_s21 = scalar_lea.vmem [#allocation2], %s1703_s1 }
  0x2b   : > { %s352_s13 = scalar_lea.hbm %s2716_s0, %s1719_s27  ;;  %s355_s25 = sshll.u32 %s347_s21, 4  ;;  %s356_s25 = int_to_ptr.vmem [resolvable:$true] %s355_s25 }
  0x2c   : > { %s353_s20 = sshll.u32 %s352_s13, 4  ;;  %p2257_p8 = pnand %p1774_p6, %p44_p2  ;;  %s354_s20 = int_to_ptr.hbm [resolvable:$true] %s353_s20 }
  0x2d   : > { %s344_s26 = scalar_lea.sflag [#allocation3], %s343_s19  ;;  %s1978_s2 = sshra.s32 %s354_s20, 4  ;;  %s1979_s2 = int_to_ptr.hbm [resolvable:$true] %s1978_s2 }
  0x2e   : > { %s1980_s3 = scalar_lea.hbm %s1979_s2, 128  ;;  %p1982_p9 = pneg %p2257_p8 }
  0x2f   : > { %p1981_p7 = scmp.ne.s32.totalorder %s1979_s2, %s1980_s3  ;;  %s1985_s1 = scalar_lea.hbm %s2716_s0, 256 }
  0x30   : > { %p1986_p0 = scmp.lt.s32.totalorder %s1979_s2, %s2716_s0  ;;  %p1987_p2 = scmp.lt.s32.totalorder %s1985_s1, %s1980_s3 }
  0x31   : > { %p1983_p10 = pnand %p1982_p9, %p1981_p7 }
  0x32   : > { %p1988_p6 = por %p1987_p2, %p1986_p0 }
  0x33   : > { %p1984_p11 = pneg %p1983_p10 }
  0x35   : > { %p1989_p5 = pnand %p1988_p6, %p1984_p11 }
  0x37   : > { %1992 = shalt.err (!%p1989_p5)
}
  0x38   : > { %s2752_s19 = smov 8   ;;  %s2753_s21 = smov 128  }
  0x39   : > { %1764 = dma.hbm_to_vmem [thread:$0]  (!%p2257_p8), %s354_s20, 2048, %s356_s25, %s344_s26, %s2753_s21, %s2753_s21, %s2752_s19  }
  0x3a   : > { %367 = sbr.rel (%p2180_p3) target bundleno = 892 (0x37c), region = 56  ;;  %s2277_s27 = sand.u32 (!%p2180_p3), 1, %s2078_s10  }
  0x3b   : > { %s1707_s2 = sshll.u32 (!%p2180_p3), %s2277_s27, 7  ;;  %s370_s3 = scalar_lea.sflag (!%p2180_p3), [#allocation3], %s2277_s27 }
  0x3c   : > { %s2283_s28 = scalar_lea.vmem (!%p2180_p3), [#allocation2], %s1707_s2 }
  0x3f   : > { %2053 = dma.done.wait (%p2239_p12), %s370_s3, 2048  }
  0x40   : > { %2055 = vsyncadd (%p2239_p12), %s370_s3, 4294965248 }
  0x41   : > { %2057 = dma.done.wait (%p49_p1), [#allocation6], 6192  }
  0x42   : > { %2059 = vsyncadd (%p49_p1), [#allocation6], 4294961104 }
  0x43   : > { %2061 = dma.done.wait (%p49_p1), [#allocation9], 16384  }
  0x44   : > { %2063 = vsyncadd (%p49_p1), [#allocation9], 4294950912 }
  0x45   : > { %2065 = dma.done.wait (%p49_p1), [#allocation12], 2048  }
  0x46   : > { %2067 = vsyncadd (%p49_p1), [#allocation12], 4294965248  ;;  %v497_v0 = vld [vmem:[#allocation5 + $0x168] sm:$0xff]  ;;  %v494_v1 = vld [vmem:[#allocation5 + $0x150] sm:$0xff]  ;;  %s2664_s1 = scalar_lea.vmem [#allocation13], %s1707_s2  ;;  %s1720_s29 = sshll.u32 %s2175_s16, 7 }
  0x47   : > { %v499_v2 = vld [vmem:[#allocation5 + $0x178] sm:$0xff]  ;;  %508 = vmatpush.msra.mxu0 %v497_v0  ;;  %v496_v3 = vld [vmem:[#allocation5 + $0x160] sm:$0xff]  ;;  %v498_v5 = vld [vmem:[#allocation5 + $0x170] sm:$0xff]  ;;  %s1570_s21 = scalar_lea.hbm %s2725_s9, %s1720_s29  ;;  %s1571_s2 = sshll.u32 %s2664_s1, 4  ;;  %s1572_s2 = int_to_ptr.vmem [resolvable:$true] %s1571_s2 }
  0x48   : > { %638 = vmatpush.msra.mxu2 %v499_v2  ;;  %v491_v4 = vld [vmem:[#allocation5 + $0x138] sm:$0xff]  ;;  %v493_v6 = vld [vmem:[#allocation5 + $0x148] sm:$0xff]  ;;  %v488_v8 = vld [vmem:[#allocation5 + $0x120] sm:$0xff]  ;;  %573 = vmatpush.msra.mxu1 %v498_v5  ;;  %s1573_s3 = sshll.u32 %s1570_s21, 4  ;;  %s2028_s23 = scalar_lea.hbm %s2725_s9, 256  ;;  %s1574_s3 = int_to_ptr.hbm [resolvable:$true] %s1573_s3 }
  0x49   : > { %509 = vmatpush.msra.mxu0 %v494_v1  ;;  %v495_v7 = vld [vmem:[#allocation5 + $0x158] sm:$0xff]  ;;  %v490_v9 = vld [vmem:[#allocation5 + $0x130] sm:$0xff]  ;;  %v492_v10 = vld [vmem:[#allocation5 + $0x140] sm:$0xff]  ;;  %s2022_s17 = sshra.s32 %s1574_s3, 4  ;;  %s2023_s17 = int_to_ptr.hbm [resolvable:$true] %s2022_s17 }
  0x4a   : > { %639 = vmatpush.msra.mxu2 %v496_v3  ;;  %v485_v11 = vld [vmem:[#allocation5 + $0x108] sm:$0xff]  ;;  %574 = vmatpush.msra.mxu1 %v495_v7  ;;  %v487_v12 = vld [vmem:[#allocation5 + $0x118] sm:$0xff]  ;;  %v482_v14 = vld [vmem:[#allocation5 + $0xf0] sm:$0xff]  ;;  %s2024_s25 = scalar_lea.hbm %s2023_s17, 128  ;;  %p2029_p12 = scmp.lt.s32.totalorder %s2023_s17, %s2725_s9 }
  0x4b   : > { %510 = vmatpush.msra.mxu0 %v491_v4  ;;  %v489_v13 = vld [vmem:[#allocation5 + $0x128] sm:$0xff]  ;;  %v484_v15 = vld [vmem:[#allocation5 + $0x100] sm:$0xff]  ;;  %v486_v16 = vld [vmem:[#allocation5 + $0x110] sm:$0xff]  ;;  %p2025_p1 = scmp.ne.s32.totalorder %s2023_s17, %s2024_s25  ;;  %p2030_p8 = scmp.lt.s32.totalorder %s2028_s23, %s2024_s25 }
  0x4c   : > { %640 = vmatpush.msra.mxu2 %v493_v6  ;;  %575 = vmatpush.msra.mxu1 %v492_v10  ;;  %v479_v17 = vld [vmem:[#allocation5 + $0xd8] sm:$0xff]  ;;  %v481_v18 = vld [vmem:[#allocation5 + $0xe8] sm:$0xff]  ;;  %v476_v20 = vld [vmem:[#allocation5 + $0xc0] sm:$0xff] }
  0x4d   : > { %511 = vmatpush.msra.mxu0 %v488_v8  ;;  %v483_v19 = vld [vmem:[#allocation5 + $0xf8] sm:$0xff]  ;;  %v478_v21 = vld [vmem:[#allocation5 + $0xd0] sm:$0xff]  ;;  %v480_v22 = vld [vmem:[#allocation5 + $0xe0] sm:$0xff]  ;;  %p2026_p3 = pnand %p2025_p1, %p2243_p13  ;;  %p2031_p7 = por %p2030_p8, %p2029_p12 }
  0x4e   : > { %641 = vmatpush.msra.mxu2 %v490_v9  ;;  %576 = vmatpush.msra.mxu1 %v489_v13  ;;  %v473_v23 = vld [vmem:[#allocation5 + $0xa8] sm:$0xff]  ;;  %v475_v24 = vld [vmem:[#allocation5 + $0xb8] sm:$0xff]  ;;  %v470_v26 = vld [vmem:[#allocation5 + $0x90] sm:$0xff] }
  0x4f   : > { %512 = vmatpush.msra.mxu0 %v485_v11  ;;  %v477_v25 = vld [vmem:[#allocation5 + $0xc8] sm:$0xff]  ;;  %v472_v27 = vld [vmem:[#allocation5 + $0xa0] sm:$0xff]  ;;  %v474_v28 = vld [vmem:[#allocation5 + $0xb0] sm:$0xff]  ;;  %p2027_p5 = pneg %p2026_p3 }
  0x50   : > { %642 = vmatpush.msra.mxu2 %v487_v12  ;;  %577 = vmatpush.msra.mxu1 %v486_v16  ;;  %v467_v29 = vld [vmem:[#allocation5 + $0x78] sm:$0xff]  ;;  %v469_v30 = vld [vmem:[#allocation5 + $0x88] sm:$0xff]  ;;  %v464_v32 = vld [vmem:[#allocation5 + $0x60] sm:$0xff] }
  0x51   : > { %513 = vmatpush.msra.mxu0 %v482_v14  ;;  %v471_v31 = vld [vmem:[#allocation5 + $0x98] sm:$0xff]  ;;  %v466_v33 = vld [vmem:[#allocation5 + $0x70] sm:$0xff]  ;;  %v468_v34 = vld [vmem:[#allocation5 + $0x80] sm:$0xff]  ;;  %p2032_p9 = pnand %p2031_p7, %p2027_p5 }
  0x52   : > { %643 = vmatpush.msra.mxu2 %v484_v15  ;;  %578 = vmatpush.msra.mxu1 %v483_v19  ;;  %v461_v35 = vld [vmem:[#allocation5 + $0x48] sm:$0xff]  ;;  %v463_v36 = vld [vmem:[#allocation5 + $0x58] sm:$0xff]  ;;  %v458_v38 = vld [vmem:[#allocation5 + $0x30] sm:$0xff] }
  0x53   : > { %514 = vmatpush.msra.mxu0 %v479_v17  ;;  %v465_v37 = vld [vmem:[#allocation5 + $0x68] sm:$0xff]  ;;  %v460_v39 = vld [vmem:[#allocation5 + $0x40] sm:$0xff]  ;;  %v462_v40 = vld [vmem:[#allocation5 + $0x50] sm:$0xff] }
  0x54   : > { %644 = vmatpush.msra.mxu2 %v481_v18  ;;  %579 = vmatpush.msra.mxu1 %v480_v22  ;;  %v455_v41 = vld [vmem:[#allocation5 + $0x18] sm:$0xff]  ;;  %v457_v42 = vld [vmem:[#allocation5 + $0x28] sm:$0xff]  ;;  %v452_v44 = vld [vmem:[#allocation5] sm:$0xff] }
  0x55   : > { %515 = vmatpush.msra.mxu0 %v476_v20  ;;  %v459_v43 = vld [vmem:[#allocation5 + $0x38] sm:$0xff]  ;;  %v454_v45 = vld [vmem:[#allocation5 + $0x10] sm:$0xff]  ;;  %v436_v46 = vld [vmem:[%s2283_s28] sm:$0xff] }
  0x56   : > { %645 = vmatpush.msra.mxu2 %v478_v21  ;;  %580 = vmatpush.msra.mxu1 %v477_v25  ;;  %v456_v47 = vld [vmem:[#allocation5 + $0x20] sm:$0xff]  ;;  %v813_v48 = vld [vmem:[#allocation8 + $0x1f0] sm:$0xff]  ;;  %v453_v49 = vld [vmem:[#allocation5 + $0x8] sm:$0xff] }
  0x57   : > { %516 = vmatpush.msra.mxu0 %v473_v23  ;;  %v811_v50 = vld [vmem:[#allocation8 + $0x1e0] sm:$0xff]  ;;  %v809_v51 = vld [vmem:[#allocation8 + $0x1d0] sm:$0xff]  ;;  %v782_v6 = vld [vmem:[#allocation8 + $0xf8] sm:$0xff] }
  0x58   : > { %646 = vmatpush.msra.mxu2 %v475_v24  ;;  %581 = vmatpush.msra.mxu1 %v474_v28  ;;  %v807_v52 = vld [vmem:[#allocation8 + $0x1c0] sm:$0xff]  ;;  %v805_v54 = vld [vmem:[#allocation8 + $0x1b0] sm:$0xff]  ;;  %v780_v8 = vld [vmem:[#allocation8 + $0xe8] sm:$0xff] }
  0x59   : > { %517 = vmatpush.msra.mxu0 %v470_v26  ;;  %v437_v53 = vld [vmem:[%s2283_s28 + $0x8] sm:$0xff]  ;;  %v438_v55 = vld [vmem:[%s2283_s28 + $0x10] sm:$0xff]  ;;  %v439_v57 = vld [vmem:[%s2283_s28 + $0x18] sm:$0xff] }
  0x5a   : > { %647 = vmatpush.msra.mxu2 %v472_v27  ;;  %582 = vmatpush.msra.mxu1 %v471_v31  ;;  %v803_v56 = vld [vmem:[#allocation8 + $0x1a0] sm:$0xff]  ;;  %v801_v58 = vld [vmem:[#allocation8 + $0x190] sm:$0xff]  ;;  %v778_v10 = vld [vmem:[#allocation8 + $0xd8] sm:$0xff] }
  0x5b   : > { %518 = vmatpush.msra.mxu0 %v467_v29  ;;  %v440_v59 = vld [vmem:[%s2283_s28 + $0x20] sm:$0xff]  ;;  %v441_v61 = vld [vmem:[%s2283_s28 + $0x28] sm:$0xff]  ;;  %v797_v62 = vld [vmem:[#allocation8 + $0x170] sm:$0xff] }
  0x5c   : > { %648 = vmatpush.msra.mxu2 %v469_v30  ;;  %583 = vmatpush.msra.mxu1 %v468_v34  ;;  %v799_v60 = vld [vmem:[#allocation8 + $0x180] sm:$0xff]  ;;  %v442_v63 = vld [vmem:[%s2283_s28 + $0x30] sm:$0xff]  ;;  %v443_v1 = vld [vmem:[%s2283_s28 + $0x38] sm:$0xff] }
  0x5d   : > { %519 = vmatpush.msra.mxu0 %v464_v32  ;;  %v795_v0 = vld [vmem:[#allocation8 + $0x160] sm:$0xff]  ;;  %v793_v2 = vld [vmem:[#allocation8 + $0x150] sm:$0xff]  ;;  %v776_v13 = vld [vmem:[#allocation8 + $0xc8] sm:$0xff] }
  0x5e   : > { %649 = vmatpush.msra.mxu2 %v466_v33  ;;  %584 = vmatpush.msra.mxu1 %v465_v37  ;;  %v444_v3 = vld [vmem:[%s2283_s28 + $0x40] sm:$0xff]  ;;  %v781_v5 = vld [vmem:[#allocation8 + $0xf0] sm:$0xff]  ;;  %v445_v11 = vld [vmem:[%s2283_s28 + $0x48] sm:$0xff] }
  0x5f   : > { %520 = vmatpush.msra.mxu0 %v461_v35  ;;  %v791_v4 = vld [vmem:[#allocation8 + $0x140] sm:$0xff]  ;;  %853 = vmatpush.msra.mxu3 %v781_v5  ;;  %v777_v9 = vld [vmem:[#allocation8 + $0xd0] sm:$0xff]  ;;  %v774_v16 = vld [vmem:[#allocation8 + $0xb8] sm:$0xff] }
  0x60   : > { %650 = vmatpush.msra.mxu2 %v463_v36  ;;  %585 = vmatpush.msra.mxu1 %v462_v40  ;;  %v779_v7 = vld [vmem:[#allocation8 + $0xe0] sm:$0xff]  ;;  %v789_v14 = vld [vmem:[#allocation8 + $0x130] sm:$0xff]  ;;  %v772_v19 = vld [vmem:[#allocation8 + $0xa8] sm:$0xff] }
  0x61   : > { %521 = vmatpush.msra.mxu0 %v458_v38  ;;  %854 = vmatpush.msra.mxu3 %v779_v7  ;;  %v775_v12 = vld [vmem:[#allocation8 + $0xc0] sm:$0xff]  ;;  %v773_v15 = vld [vmem:[#allocation8 + $0xb0] sm:$0xff]  ;;  %v770_v23 = vld [vmem:[#allocation8 + $0x98] sm:$0xff] }
  0x62   : > { %651 = vmatpush.msra.mxu2 %v460_v39  ;;  %586 = vmatpush.msra.mxu1 %v459_v43  ;;  %v771_v17 = vld [vmem:[#allocation8 + $0xa0] sm:$0xff]  ;;  %v845_v18 = vld [vmem:[#allocation8 + $0x2f0] sm:$0xff]  ;;  %v768_v26 = vld [vmem:[#allocation8 + $0x88] sm:$0xff] }
  0x63   : > { %522 = vmatpush.msra.mxu0 %v455_v41  ;;  %855 = vmatpush.msra.mxu3 %v777_v9  ;;  %v769_v20 = vld [vmem:[#allocation8 + $0x90] sm:$0xff]  ;;  %v843_v21 = vld [vmem:[#allocation8 + $0x2e0] sm:$0xff]  ;;  %v766_v30 = vld [vmem:[#allocation8 + $0x78] sm:$0xff] }
  0x64   : > { %652 = vmatpush.msra.mxu2 %v457_v42  ;;  %587 = vmatpush.msra.mxu1 %v456_v47  ;;  %v446_v22 = vld [vmem:[%s2283_s28 + $0x50] sm:$0xff]  ;;  %v767_v24 = vld [vmem:[#allocation8 + $0x80] sm:$0xff]  ;;  %v447_v34 = vld [vmem:[%s2283_s28 + $0x58] sm:$0xff] }
  0x65   : > { %523 = vmatpush.msra.mxu0 %v452_v44  ;;  %856 = vmatpush.msra.mxu3 %v775_v12  ;;  %v841_v25 = vld [vmem:[#allocation8 + $0x2d0] sm:$0xff]  ;;  %v787_v27 = vld [vmem:[#allocation8 + $0x120] sm:$0xff]  ;;  %v764_v33 = vld [vmem:[#allocation8 + $0x68] sm:$0xff] }
  0x66   : > { %653 = vmatpush.msra.mxu2 %v454_v45  ;;  %524 = vmatmul.f32.vlgmr.msra.gmra.mxu0 %v436_v46  ;;  %v765_v28 = vld [vmem:[#allocation8 + $0x70] sm:$0xff]  ;;  %v839_v29 = vld [vmem:[#allocation8 + $0x2c0] sm:$0xff]  ;;  %v762_v37 = vld [vmem:[#allocation8 + $0x58] sm:$0xff] }
  0x67   : > { %654 = vmatmul.f32.vlgmr.msra.gmra.mxu2 %v436_v46  ;;  %918 = vmatpush.msrb.mxu0 %v813_v48  ;;  %v763_v31 = vld [vmem:[#allocation8 + $0x60] sm:$0xff]  ;;  %v837_v32 = vld [vmem:[#allocation8 + $0x2b0] sm:$0xff]  ;;  %v760_v40 = vld [vmem:[#allocation8 + $0x48] sm:$0xff] }
  0x68   : > { %588 = vmatpush.msra.mxu1 %v453_v49  ;;  %1048 = vmatpush.msrb.mxu2 %v782_v6  ;;  %v761_v35 = vld [vmem:[#allocation8 + $0x50] sm:$0xff]  ;;  %v835_v36 = vld [vmem:[#allocation8 + $0x2a0] sm:$0xff]  ;;  %v758_v44 = vld [vmem:[#allocation8 + $0x38] sm:$0xff] }
  0x69   : > { %919 = vmatpush.msrb.mxu0 %v811_v50  ;;  %589 = vmatmul.f32.vlgmr.msra.gmra.mxu1 %v436_v46  ;;  %v759_v38 = vld [vmem:[#allocation8 + $0x40] sm:$0xff]  ;;  %v833_v39 = vld [vmem:[#allocation8 + $0x290] sm:$0xff]  ;;  %v756_v48 = vld [vmem:[#allocation8 + $0x28] sm:$0xff] }
  0x6a   : > { %1049 = vmatpush.msrb.mxu2 %v780_v8  ;;  %857 = vmatpush.msra.mxu3 %v773_v15  ;;  %v785_v41 = vld [vmem:[#allocation8 + $0x110] sm:$0xff]  ;;  %v831_v43 = vld [vmem:[#allocation8 + $0x280] sm:$0xff]  ;;  %v500_v5 = vld [vmem:[#allocation7] sm:$0x7] }
  0x6b   : > { %920 = vmatpush.msrb.mxu0 %v809_v51  ;;  %983 = vmatpush.msrb.mxu1 %v845_v18  ;;  %v757_v42 = vld [vmem:[#allocation8 + $0x30] sm:$0xff]  ;;  %v755_v45 = vld [vmem:[#allocation8 + $0x20] sm:$0xff]  ;;  %v754_v51 = vld [vmem:[#allocation8 + $0x18] sm:$0xff]  ;;  %v2317_v6 = vperm.slane %v500_v5, 0 }
  0x6c   : > { %1050 = vmatpush.msrb.mxu2 %v778_v10  ;;  %858 = vmatpush.msra.mxu3 %v771_v17  ;;  %v829_v46 = vld [vmem:[#allocation8 + $0x270] sm:$0xff]  ;;  %v448_v47 = vld [vmem:[%s2283_s28 + $0x60] sm:$0xff]  ;;  %v808_v7 = vld [vmem:[#allocation8 + $0x1c8] sm:$0xff] }
  0x6d   : > { %921 = vmatpush.msrb.mxu0 %v807_v52  ;;  %984 = vmatpush.msrb.mxu1 %v843_v21  ;;  %v753_v49 = vld [vmem:[#allocation8 + $0x10] sm:$0xff]  ;;  %v827_v50 = vld [vmem:[#allocation8 + $0x260] sm:$0xff]  ;;  %v842_v8 = vld [vmem:[#allocation8 + $0x2d8] sm:$0xff] }
  0x6e   : > { %527 = vmatmul.f32.gmra.mxu0 %v437_v53  ;;  %1051 = vmatpush.msrb.mxu2 %v776_v13  ;;  %v751_v52 = vld [vmem:[#allocation8] sm:$0xff]  ;;  %v2322_v13 = vperm.slane %v500_v5, 2  ;;  %v840_v17 = vld [vmem:[#allocation8 + $0x2c8] sm:$0xff] }
  0x6f   : > { %657 = vmatmul.f32.gmra.mxu2 %v437_v53  ;;  %922 = vmatpush.msrb.mxu0 %v805_v54  ;;  %v752_v54 = vld [vmem:[#allocation8 + $0x8] sm:$0xff] }
  0x70   : > { %1052 = vmatpush.msrb.mxu2 %v774_v16  ;;  %859 = vmatpush.msra.mxu3 %v769_v20  ;;  %v806_v16 = vld [vmem:[#allocation8 + $0x1b8] sm:$0xff] }
  0x71   : > { %592 = vmatmul.f32.gmra.mxu1 %v437_v53  ;;  %923 = vmatpush.msrb.mxu0 %v803_v56  ;;  %v825_v53 = vld [vmem:[#allocation8 + $0x250] sm:$0xff]  ;;  %v814_v56 = vld [vmem:[#allocation8 + $0x1f8] sm:$0xff] }
  0x72   : > { %1053 = vmatpush.msrb.mxu2 %v772_v19  ;;  %860 = vmatpush.msra.mxu3 %v767_v24 }
  0x73   : > { %924 = vmatpush.msrb.mxu0 %v801_v58  ;;  %985 = vmatpush.msrb.mxu1 %v841_v25  ;;  %v449_v58 = vld [vmem:[%s2283_s28 + $0x68] sm:$0xff] }
  0x74   : > { %1054 = vmatpush.msrb.mxu2 %v770_v23  ;;  %861 = vmatpush.msra.mxu3 %v765_v28  ;;  %v838_v28 = vld [vmem:[#allocation8 + $0x2b8] sm:$0xff] }
  0x75   : > { %925 = vmatpush.msrb.mxu0 %v799_v60  ;;  %986 = vmatpush.msrb.mxu1 %v839_v29  ;;  %v819_v60 = vld [vmem:[#allocation8 + $0x220] sm:$0xff] }
  0x76   : > { %530 = vmatmul.f32.gmra.mxu0 %v438_v55  ;;  %1055 = vmatpush.msrb.mxu2 %v768_v26 }
  0x77   : > { %660 = vmatmul.f32.gmra.mxu2 %v438_v55  ;;  %926 = vmatpush.msrb.mxu0 %v797_v62  ;;  %v812_v62 = vld [vmem:[#allocation8 + $0x1e8] sm:$0xff] }
  0x78   : > { %1056 = vmatpush.msrb.mxu2 %v766_v30  ;;  %862 = vmatpush.msra.mxu3 %v763_v31 }
  0x79   : > { %595 = vmatmul.f32.gmra.mxu1 %v438_v55  ;;  %927 = vmatpush.msrb.mxu0 %v795_v0  ;;  %v783_v55 = vld [vmem:[#allocation8 + $0x100] sm:$0xff] }
  0x7a   : > { %987 = vmatpush.msrb.mxu1 %v837_v32  ;;  %1057 = vmatpush.msrb.mxu2 %v764_v33  ;;  %v815_v0 = vld [vmem:[#allocation8 + $0x200] sm:$0xff] }
  0x7b   : > { %928 = vmatpush.msrb.mxu0 %v793_v2  ;;  %863 = vmatpush.msra.mxu3 %v761_v35  ;;  %v810_v2 = vld [vmem:[#allocation8 + $0x1d8] sm:$0xff] }
  0x7c   : > { %988 = vmatpush.msrb.mxu1 %v835_v36  ;;  %1058 = vmatpush.msrb.mxu2 %v762_v37 }
  0x7d   : > { %929 = vmatpush.msrb.mxu0 %v791_v4  ;;  %864 = vmatpush.msra.mxu3 %v759_v38  ;;  %v451_v4 = vld [vmem:[%s2283_s28 + $0x78] sm:$0xff] }
  0x7e   : > { %533 = vmatmul.f32.gmra.mxu0 %v439_v57  ;;  %989 = vmatpush.msrb.mxu1 %v833_v39  ;;  %v802_v38 = vld [vmem:[#allocation8 + $0x198] sm:$0xff]  ;;  %v836_v39 = vld [vmem:[#allocation8 + $0x2a8] sm:$0xff] }
  0x7f   : > { %663 = vmatmul.f32.gmra.mxu2 %v439_v57  ;;  %930 = vmatpush.msrb.mxu0 %v789_v14 }
  0x80   : > { %1059 = vmatpush.msrb.mxu2 %v760_v40  ;;  %865 = vmatpush.msra.mxu3 %v757_v42 }
  0x81   : > { %598 = vmatmul.f32.gmra.mxu1 %v439_v57  ;;  %931 = vmatpush.msrb.mxu0 %v787_v27  ;;  %v823_v57 = vld [vmem:[#allocation8 + $0x240] sm:$0xff]  ;;  %v804_v27 = vld [vmem:[#allocation8 + $0x1a8] sm:$0xff] }
  0x82   : > { %990 = vmatpush.msrb.mxu1 %v831_v43  ;;  %1060 = vmatpush.msrb.mxu2 %v758_v44 }
  0x83   : > { %932 = vmatpush.msrb.mxu0 %v785_v41  ;;  %866 = vmatpush.msra.mxu3 %v755_v45 }
  0x84   : > { %991 = vmatpush.msrb.mxu1 %v829_v46  ;;  %1061 = vmatpush.msrb.mxu2 %v756_v48 }
  0x85   : > { %867 = vmatpush.msra.mxu3 %v753_v49  ;;  %933 = vmatpush.msrb.mxu0 %v783_v55  ;;  %v800_v49 = vld [vmem:[#allocation8 + $0x188] sm:$0xff] }
  0x86   : > { %536 = vmatmul.f32.gmra.mxu0 %v440_v59  ;;  %992 = vmatpush.msrb.mxu1 %v827_v50  ;;  %v834_v50 = vld [vmem:[#allocation8 + $0x298] sm:$0xff] }
  0x87   : > { %666 = vmatmul.f32.gmra.mxu2 %v440_v59  ;;  %868 = vmatpush.msra.mxu3 %v751_v52 }
  0x88   : > { %1062 = vmatpush.msrb.mxu2 %v754_v51  ;;  %993 = vmatpush.msrb.mxu1 %v825_v53 }
  0x89   : > { %601 = vmatmul.f32.gmra.mxu1 %v440_v59  ;;  %1113 = vmatpush.msrb.mxu3 %v814_v56  ;;  %v821_v59 = vld [vmem:[#allocation8 + $0x230] sm:$0xff] }
  0x8a   : > { %1063 = vmatpush.msrb.mxu2 %v752_v54  ;;  %994 = vmatpush.msrb.mxu1 %v823_v57 }
  0x8b   : > { %1114 = vmatpush.msrb.mxu3 %v812_v62 }
  0x8c   : > { %995 = vmatpush.msrb.mxu1 %v821_v59 }
  0x8d   : > { %1115 = vmatpush.msrb.mxu3 %v810_v2 }
  0x8e   : > { %539 = vmatmul.f32.gmra.mxu0 %v441_v61  ;;  %996 = vmatpush.msrb.mxu1 %v819_v60  ;;  %v798_v60 = vld [vmem:[#allocation8 + $0x178] sm:$0xff] }
  0x8f   : > { %669 = vmatmul.f32.gmra.mxu2 %v441_v61  ;;  %1116 = vmatpush.msrb.mxu3 %v808_v7 }
  0x91   : > { %604 = vmatmul.f32.gmra.mxu1 %v441_v61  ;;  %v817_v61 = vld [vmem:[#allocation8 + $0x210] sm:$0xff]  ;;  %1117 = vmatpush.msrb.mxu3 %v806_v16 }
  0x92   : > { %997 = vmatpush.msrb.mxu1 %v817_v61  ;;  %v832_v61 = vld [vmem:[#allocation8 + $0x288] sm:$0xff] }
  0x93   : > { %1118 = vmatpush.msrb.mxu3 %v804_v27  ;;  %v828_v27 = vld [vmem:[#allocation8 + $0x268] sm:$0xff] }
  0x94   : > { %998 = vmatpush.msrb.mxu1 %v815_v0 }
  0x95   : > { %1119 = vmatpush.msrb.mxu3 %v802_v38 }
  0x96   : > { %542 = vmatmul.f32.gmra.mxu0 %v442_v63 }
  0x97   : > { %672 = vmatmul.f32.gmra.mxu2 %v442_v63  ;;  %1120 = vmatpush.msrb.mxu3 %v800_v49 }
  0x99   : > { %607 = vmatmul.f32.gmra.mxu1 %v442_v63  ;;  %v846_v63 = vld [vmem:[#allocation8 + $0x2f8] sm:$0xff]  ;;  %1121 = vmatpush.msrb.mxu3 %v798_v60 }
  0x9a   : > { %1178 = vmatpush.msra.mxu0 %v846_v63  ;;  %v790_v60 = vld [vmem:[#allocation8 + $0x138] sm:$0xff] }
  0x9e   : > { %545 = vmatmul.f32.gmra.mxu0 %v443_v1 }
  0x9f   : > { %675 = vmatmul.f32.gmra.mxu2 %v443_v1 }
  0xa1   : > { %610 = vmatmul.f32.gmra.mxu1 %v443_v1  ;;  %v450_v1 = vld [vmem:[%s2283_s28 + $0x70] sm:$0xff]  ;;  %s1559_s28 = scalar_lea.sflag [#allocation4], %s2277_s27 }
  0xa6   : > { %548 = vmatmul.f32.gmra.mxu0 %v444_v3 }
  0xa7   : > { %678 = vmatmul.f32.gmra.mxu2 %v444_v3 }
  0xa9   : > { %613 = vmatmul.f32.gmra.mxu1 %v444_v3  ;;  %v844_v3 = vld [vmem:[#allocation8 + $0x2e8] sm:$0xff] }
  0xaa   : > { %1179 = vmatpush.msra.mxu0 %v844_v3 }
  0xac   : > { %1180 = vmatpush.msra.mxu0 %v842_v8  ;;  %v796_v8 = vld [vmem:[#allocation8 + $0x168] sm:$0xff] }
  0xad   : > { %1122 = vmatpush.msrb.mxu3 %v796_v8 }
  0xae   : > { %551 = vmatmul.f32.gmra.mxu0 %v445_v11 }
  0xaf   : > { %681 = vmatmul.f32.gmra.mxu2 %v445_v11  ;;  %1181 = vmatpush.msra.mxu0 %v840_v17 }
  0xb1   : > { %616 = vmatmul.f32.gmra.mxu1 %v445_v11  ;;  %v2320_v11 = vperm.slane %v500_v5, 1  ;;  %1182 = vmatpush.msra.mxu0 %v838_v28 }
  0xb3   : > { %1183 = vmatpush.msra.mxu0 %v836_v39 }
  0xb5   : > { %1184 = vmatpush.msra.mxu0 %v834_v50 }
  0xb6   : > { %554 = vmatmul.f32.gmra.mxu0 %v446_v22 }
  0xb7   : > { %684 = vmatmul.f32.gmra.mxu2 %v446_v22  ;;  %1185 = vmatpush.msra.mxu0 %v832_v61  ;;  %v824_v61 = vld [vmem:[#allocation8 + $0x248] sm:$0xff] }
  0xb9   : > { %619 = vmatmul.f32.gmra.mxu1 %v446_v22 }
  0xbe   : > { %557 = vmatmul.f32.gmra.mxu0 %v447_v34 }
  0xbf   : > { %687 = vmatmul.f32.gmra.mxu2 %v447_v34 }
  0xc1   : > { %622 = vmatmul.f32.gmra.mxu1 %v447_v34 }
  0xc6   : > { %560 = vmatmul.f32.gmra.mxu0 %v448_v47 }
  0xc7   : > { %690 = vmatmul.f32.gmra.mxu2 %v448_v47 }
  0xc9   : > { %625 = vmatmul.f32.gmra.mxu1 %v448_v47 }
  0xce   : > { %563 = vmatmul.f32.gmra.mxu0 %v449_v58 }
  0xcf   : > { %693 = vmatmul.f32.gmra.mxu2 %v449_v58 }
  0xd1   : > { %628 = vmatmul.f32.gmra.mxu1 %v449_v58 }
  0xd6   : > { %566 = vmatmul.f32.gmra.mxu0 %v450_v1 }
  0xd7   : > { %696 = vmatmul.f32.gmra.mxu2 %v450_v1 }
  0xd9   : > { %631 = vmatmul.f32.gmra.mxu1 %v450_v1 }
  0xde   : > { %569 = vmatmul.f32.gmra.mxu0 %v451_v4 }
  0xdf   : > { %699 = vmatmul.f32.gmra.mxu2 %v451_v4 }
  0xe1   : > { %634 = vmatmul.f32.gmra.mxu1 %v451_v4 }
  0xe3   : > { %v525_v9 = vpop.f32.mrf.mxu0 }
  0xe4   : > { %v526_v10 = vadd.f32 %v525_v9, %v2317_v6  ;;  %v830_v9 = vld [vmem:[#allocation8 + $0x278] sm:$0xff] }
  0xe5   : > { %1186 = vmatpush.msra.mxu0 %v830_v9 }
  0xe6   : > { %v703_v12 = vmax.f32 %v526_v10, 0.0  ;;  %v590_v14 = vpop.f32.mrf.mxu1 }
  0xe7   : > { %v2325_v15 = vadd.f32 %v590_v14, %v2320_v11  ;;  %1187 = vmatpush.msra.mxu0 %v828_v27 }
  0xe8   : > { %869 = vmatmul.f32.vlgmr.msra.gmra.mxu3 %v703_v12  ;;  %1064 = vmatmul.f32.vlgmr.msrb.gmra.mxu2 %v703_v12 }
  0xe9   : > { %v704_v19 = vmax.f32 %v2325_v15, 0.0 }
  0xea   : > { %v655_v18 = vpop.f32.mrf.mxu2 }
  0xeb   : > { %v2329_v20 = vadd.f32 %v655_v18, %v2322_v13  ;;  %v528_v21 = vpop.f32.mrf.mxu0  ;;  %934 = vmatmul.f32.vlgmr.msrb.gmra.mxu0 %v704_v19 }
  0xec   : > { %v529_v22 = vadd.f32 %v528_v21, %v2317_v6 }
  0xed   : > { %v705_v23 = vmax.f32 %v2329_v20, 0.0 }
  0xee   : > { %v706_v24 = vmax.f32 %v529_v22, 0.0  ;;  %v593_v25 = vpop.f32.mrf.mxu1 }
  0xef   : > { %999 = vmatmul.f32.vlgmr.msrb.gmra.mxu1 %v705_v23  ;;  %v2338_v26 = vadd.f32 %v593_v25, %v2320_v11  ;;  %v794_v25 = vld [vmem:[#allocation8 + $0x158] sm:$0xff] }
  0xf0   : > { %872 = vmatmul.f32.gmra.mxu3 %v706_v24  ;;  %1067 = vmatmul.f32.gmra.mxu2 %v706_v24 }
  0xf1   : > { %v707_v31 = vmax.f32 %v2338_v26, 0.0  ;;  %1123 = vmatpush.msrb.mxu3 %v794_v25 }
  0xf2   : > { %v658_v29 = vpop.f32.mrf.mxu2 }
  0xf3   : > { %v2341_v30 = vadd.f32 %v658_v29, %v2322_v13  ;;  %v531_v32 = vpop.f32.mrf.mxu0  ;;  %937 = vmatmul.f32.gmra.mxu0 %v707_v31 }
  0xf4   : > { %v532_v33 = vadd.f32 %v531_v32, %v2317_v6 }
  0xf5   : > { %v708_v34 = vmax.f32 %v2341_v30, 0.0 }
  0xf6   : > { %v709_v35 = vmax.f32 %v532_v33, 0.0  ;;  %v596_v36 = vpop.f32.mrf.mxu1 }
  0xf7   : > { %1002 = vmatmul.f32.gmra.mxu1 %v708_v34  ;;  %v2351_v37 = vadd.f32 %v596_v36, %v2320_v11 }
  0xf8   : > { %875 = vmatmul.f32.gmra.mxu3 %v709_v35  ;;  %1070 = vmatmul.f32.gmra.mxu2 %v709_v35 }
  0xf9   : > { %v710_v42 = vmax.f32 %v2351_v37, 0.0 }
  0xfa   : > { %v661_v40 = vpop.f32.mrf.mxu2 }
  0xfb   : > { %v2354_v41 = vadd.f32 %v661_v40, %v2322_v13  ;;  %v534_v43 = vpop.f32.mrf.mxu0  ;;  %940 = vmatmul.f32.gmra.mxu0 %v710_v42 }
  0xfc   : > { %v535_v44 = vadd.f32 %v534_v43, %v2317_v6  ;;  %v792_v43 = vld [vmem:[#allocation8 + $0x148] sm:$0xff] }
  0xfd   : > { %v711_v45 = vmax.f32 %v2354_v41, 0.0  ;;  %1124 = vmatpush.msrb.mxu3 %v792_v43 }
  0xfe   : > { %v712_v46 = vmax.f32 %v535_v44, 0.0  ;;  %v599_v47 = vpop.f32.mrf.mxu1  ;;  %v826_v44 = vld [vmem:[#allocation8 + $0x258] sm:$0xff] }
  0xff   : > { %1005 = vmatmul.f32.gmra.mxu1 %v711_v45  ;;  %v2364_v48 = vadd.f32 %v599_v47, %v2320_v11  ;;  %1188 = vmatpush.msra.mxu0 %v826_v44 }
 0x100   : > { %878 = vmatmul.f32.gmra.mxu3 %v712_v46  ;;  %1073 = vmatmul.f32.gmra.mxu2 %v712_v46 }
 0x101   : > { %v713_v53 = vmax.f32 %v2364_v48, 0.0  ;;  %1125 = vmatpush.msrb.mxu3 %v790_v60  ;;  %1189 = vmatpush.msra.mxu0 %v824_v61 }
 0x102   : > { %v664_v51 = vpop.f32.mrf.mxu2 }
 0x103   : > { %v2367_v52 = vadd.f32 %v664_v51, %v2322_v13  ;;  %v537_v54 = vpop.f32.mrf.mxu0  ;;  %943 = vmatmul.f32.gmra.mxu0 %v713_v53 }
 0x104   : > { %v538_v55 = vadd.f32 %v537_v54, %v2317_v6 }
 0x105   : > { %v714_v56 = vmax.f32 %v2367_v52, 0.0 }
 0x106   : > { %v715_v57 = vmax.f32 %v538_v55, 0.0  ;;  %v602_v58 = vpop.f32.mrf.mxu1 }
 0x107   : > { %1008 = vmatmul.f32.gmra.mxu1 %v714_v56  ;;  %v2377_v59 = vadd.f32 %v602_v58, %v2320_v11 }
 0x108   : > { %881 = vmatmul.f32.gmra.mxu3 %v715_v57  ;;  %1076 = vmatmul.f32.gmra.mxu2 %v715_v57 }
 0x109   : > { %v716_v0 = vmax.f32 %v2377_v59, 0.0 }
 0x10a   : > { %v667_v62 = vpop.f32.mrf.mxu2 }
 0x10b   : > { %v2380_v63 = vadd.f32 %v667_v62, %v2322_v13  ;;  %v540_v1 = vpop.f32.mrf.mxu0  ;;  %946 = vmatmul.f32.gmra.mxu0 %v716_v0 }
 0x10c   : > { %v541_v2 = vadd.f32 %v540_v1, %v2317_v6 }
 0x10d   : > { %v717_v3 = vmax.f32 %v2380_v63, 0.0 }
 0x10e   : > { %v718_v4 = vmax.f32 %v541_v2, 0.0  ;;  %v605_v5 = vpop.f32.mrf.mxu1 }
 0x10f   : > { %1011 = vmatmul.f32.gmra.mxu1 %v717_v3  ;;  %v2390_v7 = vadd.f32 %v605_v5, %v2320_v11 }
 0x110   : > { %884 = vmatmul.f32.gmra.mxu3 %v718_v4  ;;  %1079 = vmatmul.f32.gmra.mxu2 %v718_v4 }
 0x111   : > { %v719_v14 = vmax.f32 %v2390_v7, 0.0 }
 0x112   : > { %v670_v10 = vpop.f32.mrf.mxu2 }
 0x113   : > { %v2393_v12 = vadd.f32 %v670_v10, %v2322_v13  ;;  %v543_v16 = vpop.f32.mrf.mxu0  ;;  %949 = vmatmul.f32.gmra.mxu0 %v719_v14 }
 0x114   : > { %v544_v17 = vadd.f32 %v543_v16, %v2317_v6 }
 0x115   : > { %v720_v18 = vmax.f32 %v2393_v12, 0.0 }
 0x116   : > { %v721_v21 = vmax.f32 %v544_v17, 0.0  ;;  %v608_v22 = vpop.f32.mrf.mxu1  ;;  %v788_v17 = vld [vmem:[#allocation8 + $0x128] sm:$0xff] }
 0x117   : > { %1014 = vmatmul.f32.gmra.mxu1 %v720_v18  ;;  %v2403_v24 = vadd.f32 %v608_v22, %v2320_v11  ;;  %1126 = vmatpush.msrb.mxu3 %v788_v17 }
 0x118   : > { %887 = vmatmul.f32.gmra.mxu3 %v721_v21  ;;  %1082 = vmatmul.f32.gmra.mxu2 %v721_v21  ;;  %v822_v21 = vld [vmem:[#allocation8 + $0x238] sm:$0xff] }
 0x119   : > { %v722_v32 = vmax.f32 %v2403_v24, 0.0  ;;  %1190 = vmatpush.msra.mxu0 %v822_v21  ;;  %v1285_v21 = vld [vmem:[#allocation10 + $0x50] sm:$0xff] }
 0x11a   : > { %v673_v28 = vpop.f32.mrf.mxu2 }
 0x11b   : > { %v2406_v29 = vadd.f32 %v673_v28, %v2322_v13  ;;  %v546_v33 = vpop.f32.mrf.mxu0  ;;  %952 = vmatmul.f32.gmra.mxu0 %v722_v32 }
 0x11c   : > { %v547_v35 = vadd.f32 %v546_v33, %v2317_v6 }
 0x11d   : > { %v723_v36 = vmax.f32 %v2406_v29, 0.0 }
 0x11e   : > { %v724_v38 = vmax.f32 %v547_v35, 0.0  ;;  %v611_v39 = vpop.f32.mrf.mxu1 }
 0x11f   : > { %1017 = vmatmul.f32.gmra.mxu1 %v723_v36  ;;  %v2416_v40 = vadd.f32 %v611_v39, %v2320_v11  ;;  %v1289_v39 = vld [vmem:[#allocation10 + $0x70] sm:$0xff] }
 0x120   : > { %890 = vmatmul.f32.gmra.mxu3 %v724_v38  ;;  %1085 = vmatmul.f32.gmra.mxu2 %v724_v38  ;;  %v1290_v38 = vld [vmem:[#allocation10 + $0x78] sm:$0xff] }
 0x121   : > { %v725_v49 = vmax.f32 %v2416_v40, 0.0  ;;  %1311 = vmatpush.msra.mxu1 %v1290_v38  ;;  %v818_v38 = vld [vmem:[#allocation8 + $0x218] sm:$0xff] }
 0x122   : > { %v676_v46 = vpop.f32.mrf.mxu2 }
 0x123   : > { %v2419_v47 = vadd.f32 %v676_v46, %v2322_v13  ;;  %v549_v50 = vpop.f32.mrf.mxu0  ;;  %955 = vmatmul.f32.gmra.mxu0 %v725_v49  ;;  %1312 = vmatpush.msra.mxu1 %v1289_v39  ;;  %v1284_v39 = vld [vmem:[#allocation10 + $0x48] sm:$0xff] }
 0x124   : > { %v550_v51 = vadd.f32 %v549_v50, %v2317_v6  ;;  %v786_v50 = vld [vmem:[#allocation8 + $0x118] sm:$0xff] }
 0x125   : > { %v726_v54 = vmax.f32 %v2419_v47, 0.0  ;;  %1127 = vmatpush.msrb.mxu3 %v786_v50 }
 0x126   : > { %v727_v55 = vmax.f32 %v550_v51, 0.0  ;;  %v614_v57 = vpop.f32.mrf.mxu1  ;;  %v820_v51 = vld [vmem:[#allocation8 + $0x228] sm:$0xff] }
 0x127   : > { %1020 = vmatmul.f32.gmra.mxu1 %v726_v54  ;;  %v2429_v58 = vadd.f32 %v614_v57, %v2320_v11  ;;  %1191 = vmatpush.msra.mxu0 %v820_v51  ;;  %v1283_v51 = vld [vmem:[#allocation10 + $0x40] sm:$0xff] }
 0x128   : > { %893 = vmatmul.f32.gmra.mxu3 %v727_v55  ;;  %1088 = vmatmul.f32.gmra.mxu2 %v727_v55  ;;  %v1288_v55 = vld [vmem:[#allocation10 + $0x68] sm:$0xff] }
 0x129   : > { %v728_v1 = vmax.f32 %v2429_v58, 0.0  ;;  %1313 = vmatpush.msra.mxu1 %v1288_v55  ;;  %1192 = vmatpush.msra.mxu0 %v818_v38 }
 0x12a   : > { %v679_v62 = vpop.f32.mrf.mxu2 }
 0x12b   : > { %v2433_v2 = vadd.f32 %v679_v62, %v2322_v13  ;;  %v552_v4 = vpop.f32.mrf.mxu0  ;;  %958 = vmatmul.f32.gmra.mxu0 %v728_v1  ;;  %v1287_v62 = vld [vmem:[#allocation10 + $0x60] sm:$0xff] }
 0x12c   : > { %v553_v5 = vadd.f32 %v552_v4, %v2317_v6  ;;  %1314 = vmatpush.msra.mxu1 %v1287_v62 }
 0x12d   : > { %v729_v8 = vmax.f32 %v2433_v2, 0.0 }
 0x12e   : > { %v730_v9 = vmax.f32 %v553_v5, 0.0  ;;  %v617_v10 = vpop.f32.mrf.mxu1 }
 0x12f   : > { %1023 = vmatmul.f32.gmra.mxu1 %v729_v8  ;;  %v2442_v16 = vadd.f32 %v617_v10, %v2320_v11  ;;  %v1286_v10 = vld [vmem:[#allocation10 + $0x58] sm:$0xff] }
 0x130   : > { %896 = vmatmul.f32.gmra.mxu3 %v730_v9  ;;  %1091 = vmatmul.f32.gmra.mxu2 %v730_v9 }
 0x131   : > { %v731_v25 = vmax.f32 %v2442_v16, 0.0  ;;  %1315 = vmatpush.msra.mxu1 %v1286_v10  ;;  %v1281_v10 = vld [vmem:[#allocation10 + $0x30] sm:$0xff] }
 0x132   : > { %v682_v22 = vpop.f32.mrf.mxu2 }
 0x133   : > { %v2446_v27 = vadd.f32 %v682_v22, %v2322_v13  ;;  %v555_v28 = vpop.f32.mrf.mxu0  ;;  %961 = vmatmul.f32.gmra.mxu0 %v731_v25  ;;  %1316 = vmatpush.msra.mxu1 %v1285_v21 }
 0x134   : > { %v556_v33 = vadd.f32 %v555_v28, %v2317_v6 }
 0x135   : > { %v732_v35 = vmax.f32 %v2446_v27, 0.0  ;;  %1317 = vmatpush.msra.mxu1 %v1284_v39 }
 0x136   : > { %v733_v43 = vmax.f32 %v556_v33, 0.0  ;;  %v620_v44 = vpop.f32.mrf.mxu1  ;;  %v784_v33 = vld [vmem:[#allocation8 + $0x108] sm:$0xff] }
 0x137   : > { %1026 = vmatmul.f32.gmra.mxu1 %v732_v35  ;;  %v2455_v46 = vadd.f32 %v620_v44, %v2320_v11  ;;  %1128 = vmatpush.msrb.mxu3 %v784_v33  ;;  %v1280_v33 = vld [vmem:[#allocation10 + $0x28] sm:$0xff] }
 0x138   : > { %899 = vmatmul.f32.gmra.mxu3 %v733_v43  ;;  %1094 = vmatmul.f32.gmra.mxu2 %v733_v43 }
 0x139   : > { %v2739_v60 = vmax.f32 %v2455_v46, 0.0  ;;  %1318 = vmatpush.msra.mxu1 %v1283_v51  ;;  %v1279_v51 = vld [vmem:[#allocation10 + $0x20] sm:$0xff] }
 0x13a   : > { %v685_v57 = vpop.f32.mrf.mxu2 }
 0x13b   : > { %v2459_v61 = vadd.f32 %v685_v57, %v2322_v13  ;;  %v558_v4 = vpop.f32.mrf.mxu0  ;;  %964 = vmatmul.f32.gmra.mxu0 %v2739_v60 }
 0x13c   : > { %v559_v5 = vadd.f32 %v558_v4, %v2317_v6  ;;  %v1282_v4 = vld [vmem:[#allocation10 + $0x38] sm:$0xff] }
 0x13d   : > { %v2732_v9 = vmax.f32 %v2459_v61, 0.0  ;;  %1319 = vmatpush.msra.mxu1 %v1282_v4 }
 0x13e   : > { %v736_v17 = vmax.f32 %v559_v5, 0.0  ;;  %v623_v22 = vpop.f32.mrf.mxu1 }
 0x13f   : > { %1029 = vmatmul.f32.gmra.mxu1 %v2732_v9  ;;  %v2468_v28 = vadd.f32 %v623_v22, %v2320_v11  ;;  %v816_v22 = vld [vmem:[#allocation8 + $0x208] sm:$0xff] }
 0x140   : > { %902 = vmatmul.f32.gmra.mxu3 %v736_v17  ;;  %1097 = vmatmul.f32.gmra.mxu2 %v736_v17 }
 0x141   : > { %v2730_v44 = vmax.f32 %v2468_v28, 0.0  ;;  %1320 = vmatpush.msra.mxu1 %v1281_v10  ;;  %1193 = vmatpush.msra.mxu0 %v816_v22  ;;  %v1277_v10 = vld [vmem:[#allocation10 + $0x10] sm:$0xff] }
 0x142   : > { %v688_v43 = vpop.f32.mrf.mxu2 }
 0x143   : > { %v2472_v50 = vadd.f32 %v688_v43, %v2322_v13  ;;  %v561_v55 = vpop.f32.mrf.mxu0  ;;  %967 = vmatmul.f32.gmra.mxu0 %v2730_v44  ;;  %1321 = vmatpush.msra.mxu1 %v1280_v33 }
 0x144   : > { %v562_v57 = vadd.f32 %v561_v55, %v2317_v6 }
 0x145   : > { %v2728_v62 = vmax.f32 %v2472_v50, 0.0  ;;  %1322 = vmatpush.msra.mxu1 %v1279_v51  ;;  %v1306_v51 = vld [vmem:[#allocation10 + $0xf8] sm:$0xff] }
 0x146   : > { %v739_v5 = vmax.f32 %v562_v57, 0.0  ;;  %v626_v17 = vpop.f32.mrf.mxu1  ;;  %1376 = vmatpush.msra.mxu2 %v1306_v51 }
 0x147   : > { %1032 = vmatmul.f32.gmra.mxu1 %v2728_v62  ;;  %v2481_v21 = vadd.f32 %v626_v17, %v2320_v11 }
 0x148   : > { %905 = vmatmul.f32.gmra.mxu3 %v739_v5  ;;  %1100 = vmatmul.f32.gmra.mxu2 %v739_v5  ;;  %v1278_v5 = vld [vmem:[#allocation10 + $0x18] sm:$0xff] }
 0x149   : > { %v2729_v39 = vmax.f32 %v2481_v21, 0.0  ;;  %1323 = vmatpush.msra.mxu1 %v1278_v5 }
 0x14a   : > { %v691_v38 = vpop.f32.mrf.mxu2 }
 0x14b   : > { %v2485_v43 = vadd.f32 %v691_v38, %v2322_v13  ;;  %v564_v55 = vpop.f32.mrf.mxu0  ;;  %970 = vmatmul.f32.gmra.mxu0 %v2729_v39  ;;  %v1276_v38 = vld [vmem:[#allocation10 + $0x8] sm:$0xff]  ;;  %1324 = vmatpush.msra.mxu1 %v1277_v10 }
 0x14c   : > { %v565_v57 = vadd.f32 %v564_v55, %v2317_v6 }
 0x14d   : > { %v2731_v4 = vmax.f32 %v2485_v43, 0.0  ;;  %1325 = vmatpush.msra.mxu1 %v1276_v38 }
 0x14e   : > { %v742_v17 = vmax.f32 %v565_v57, 0.0  ;;  %v629_v22 = vpop.f32.mrf.mxu1  ;;  %v1275_v57 = vld [vmem:[#allocation10] sm:$0xff] }
 0x14f   : > { %1035 = vmatmul.f32.gmra.mxu1 %v2731_v4  ;;  %v2494_v33 = vadd.f32 %v629_v22, %v2320_v11  ;;  %v1305_v4 = vld [vmem:[#allocation10 + $0xf0] sm:$0xff] }
 0x150   : > { %908 = vmatmul.f32.gmra.mxu3 %v742_v17  ;;  %1103 = vmatmul.f32.gmra.mxu2 %v742_v17 }
 0x151   : > { %v2738_v62 = vmax.f32 %v2494_v33, 0.0  ;;  %1326 = vmatpush.msra.mxu1 %v1275_v57  ;;  %1377 = vmatpush.msra.mxu2 %v1305_v4 }
 0x152   : > { %v694_v55 = vpop.f32.mrf.mxu2 }
 0x153   : > { %v2498_v39 = vadd.f32 %v694_v55, %v2322_v13  ;;  %v567_v44 = vpop.f32.mrf.mxu0  ;;  %973 = vmatmul.f32.gmra.mxu0 %v2738_v62 }
 0x154   : > { %v568_v5 = vadd.f32 %v567_v44, %v2317_v6 }
 0x155   : > { %v2733_v17 = vmax.f32 %v2498_v39, 0.0 }
 0x156   : > { %v745_v22 = vmax.f32 %v568_v5, 0.0  ;;  %v632_v10 = vpop.f32.mrf.mxu1 }
 0x157   : > { %1038 = vmatmul.f32.gmra.mxu1 %v2733_v17  ;;  %v2507_v55 = vadd.f32 %v632_v10, %v2320_v11 }
 0x158   : > { %911 = vmatmul.f32.gmra.mxu3 %v745_v22  ;;  %1106 = vmatmul.f32.gmra.mxu2 %v745_v22 }
 0x159   : > { %v2734_v51 = vmax.f32 %v2507_v55, 0.0 }
 0x15a   : > { %v697_v38 = vpop.f32.mrf.mxu2 }
 0x15b   : > { %v2511_v44 = vadd.f32 %v697_v38, %v2322_v13  ;;  %v570_v9 = vpop.f32.mrf.mxu0  ;;  %976 = vmatmul.f32.gmra.mxu0 %v2734_v51 }
 0x15c   : > { %v571_v57 = vadd.f32 %v570_v9, %v2317_v6  ;;  %v1304_v9 = vld [vmem:[#allocation10 + $0xe8] sm:$0xff] }
 0x15d   : > { %v2736_v5 = vmax.f32 %v2511_v44, 0.0  ;;  %1378 = vmatpush.msra.mxu2 %v1304_v9 }
 0x15e   : > { %v748_v22 = vmax.f32 %v571_v57, 0.0  ;;  %v635_v10 = vpop.f32.mrf.mxu1  ;;  %v2532_v57 = vld [vmem:[%s2720_s4] sm:$0x3] }
 0x15f   : > { %1041 = vmatmul.f32.gmra.mxu1 %v2736_v5  ;;  %v2520_v38 = vadd.f32 %v635_v10, %v2320_v11  ;;  %v2539_v11 = vperm.slane %v2532_v57, 0 }
 0x160   : > { %914 = vmatmul.f32.gmra.mxu3 %v748_v22  ;;  %1109 = vmatmul.f32.gmra.mxu2 %v748_v22 }
 0x161   : > { %v2735_v4 = vmax.f32 %v2520_v38, 0.0 }
 0x162   : > { %v700_v17 = vpop.f32.mrf.mxu2 }
 0x163   : > { %v2524_v6 = vadd.f32 %v700_v17, %v2322_v13  ;;  %979 = vmatmul.f32.gmra.mxu0 %v2735_v4  ;;  %v1303_v17 = vld [vmem:[#allocation10 + $0xe0] sm:$0xff] }
 0x164   : > { %1379 = vmatpush.msra.mxu2 %v1303_v17 }
 0x165   : > { %v2737_v51 = vmax.f32 %v2524_v6, 0.0 }
 0x167   : > { %1044 = vmatmul.f32.gmra.mxu1 %v2737_v51  ;;  %v1302_v51 = vld [vmem:[#allocation10 + $0xd8] sm:$0xff] }
 0x168   : > { %1129 = vmatmul.f32.vlgmr.msrb.gmra.mxu3 %v704_v19  ;;  %v935_v13 = vpop.f32.mrf.mxu0  ;;  %1380 = vmatpush.msra.mxu2 %v1302_v51 }
 0x16b   : > { %v870_v22 = vpop.f32.mrf.mxu3  ;;  %1194 = vmatmul.f32.vlgmr.msra.gmra.mxu0 %v705_v23 }
 0x16c   : > { %v871_v10 = vadd.f32 %v870_v22, %v2539_v11  ;;  %v1000_v9 = vpop.f32.mrf.mxu1 }
 0x16e   : > { %v936_v4 = vadd.f32 %v935_v13, %v871_v10 }
 0x170   : > { %v1001_v5 = vadd.f32 %v1000_v9, %v936_v4  ;;  %1132 = vmatmul.f32.gmra.mxu3 %v707_v31  ;;  %v938_v15 = vpop.f32.mrf.mxu0  ;;  %v1301_v31 = vld [vmem:[#allocation10 + $0xd0] sm:$0xff] }
 0x171   : > { %1381 = vmatpush.msra.mxu2 %v1301_v31 }
 0x172   : > { %v1243_v19 = vmax.f32 %v1001_v5, 0.0 }
 0x173   : > { %v873_v62 = vpop.f32.mrf.mxu3  ;;  %1197 = vmatmul.f32.gmra.mxu0 %v708_v34 }
 0x174   : > { %v874_v60 = vadd.f32 %v873_v62, %v2539_v11  ;;  %1327 = vmatmul.f32.vlgmr.msra.gmra.mxu1 %v1243_v19  ;;  %v1003_v17 = vpop.f32.mrf.mxu1 }
 0x176   : > { %v939_v20 = vadd.f32 %v938_v15, %v874_v60 }
 0x178   : > { %v1004_v23 = vadd.f32 %v1003_v17, %v939_v20  ;;  %1135 = vmatmul.f32.gmra.mxu3 %v710_v42  ;;  %v941_v4 = vpop.f32.mrf.mxu0  ;;  %v1300_v42 = vld [vmem:[#allocation10 + $0xc8] sm:$0xff] }
 0x179   : > { %1382 = vmatpush.msra.mxu2 %v1300_v42 }
 0x17a   : > { %v1245_v26 = vmax.f32 %v1004_v23, 0.0 }
 0x17b   : > { %v876_v13 = vpop.f32.mrf.mxu3  ;;  %1200 = vmatmul.f32.gmra.mxu0 %v711_v45 }
 0x17c   : > { %v877_v5 = vadd.f32 %v876_v13, %v2539_v11  ;;  %1330 = vmatmul.f32.gmra.mxu1 %v1245_v26  ;;  %v1006_v62 = vpop.f32.mrf.mxu1 }
 0x17e   : > { %v942_v30 = vadd.f32 %v941_v4, %v877_v5 }
 0x180   : > { %v1007_v34 = vadd.f32 %v1006_v62, %v942_v30  ;;  %1138 = vmatmul.f32.gmra.mxu3 %v713_v53  ;;  %v944_v60 = vpop.f32.mrf.mxu0  ;;  %v1299_v53 = vld [vmem:[#allocation10 + $0xc0] sm:$0xff] }
 0x181   : > { %1383 = vmatpush.msra.mxu2 %v1299_v53  ;;  %v2754_v53 = vmax.f32 %v2455_v46, 0.0 }
 0x182   : > { %v1247_v37 = vmax.f32 %v1007_v34, 0.0 }
 0x183   : > { %v879_v51 = vpop.f32.mrf.mxu3  ;;  %1203 = vmatmul.f32.gmra.mxu0 %v714_v56 }
 0x184   : > { %v880_v22 = vadd.f32 %v879_v51, %v2539_v11  ;;  %1333 = vmatmul.f32.gmra.mxu1 %v1247_v37  ;;  %v1009_v10 = vpop.f32.mrf.mxu1 }
 0x186   : > { %v945_v41 = vadd.f32 %v944_v60, %v880_v22 }
 0x188   : > { %v1010_v45 = vadd.f32 %v1009_v10, %v945_v41  ;;  %1141 = vmatmul.f32.gmra.mxu3 %v716_v0  ;;  %v947_v9 = vpop.f32.mrf.mxu0  ;;  %v1298_v0 = vld [vmem:[#allocation10 + $0xb8] sm:$0xff] }
 0x189   : > { %1384 = vmatpush.msra.mxu2 %v1298_v0  ;;  %v1292_v0 = vld [vmem:[#allocation10 + $0x88] sm:$0xff] }
 0x18a   : > { %v1249_v48 = vmax.f32 %v1010_v45, 0.0 }
 0x18b   : > { %v882_v15 = vpop.f32.mrf.mxu3  ;;  %1206 = vmatmul.f32.gmra.mxu0 %v717_v3 }
 0x18c   : > { %v883_v19 = vadd.f32 %v882_v15, %v2539_v11  ;;  %1336 = vmatmul.f32.gmra.mxu1 %v1249_v48  ;;  %v1012_v17 = vpop.f32.mrf.mxu1 }
 0x18e   : > { %v948_v52 = vadd.f32 %v947_v9, %v883_v19 }
 0x190   : > { %v1013_v56 = vadd.f32 %v1012_v17, %v948_v52  ;;  %1144 = vmatmul.f32.gmra.mxu3 %v719_v14  ;;  %v950_v20 = vpop.f32.mrf.mxu0  ;;  %v1297_v14 = vld [vmem:[#allocation10 + $0xb0] sm:$0xff]  ;;  %v2755_v52 = vmax.f32 %v2459_v61, 0.0 }
 0x191   : > { %1385 = vmatpush.msra.mxu2 %v1297_v14 }
 0x192   : > { %v1251_v59 = vmax.f32 %v1013_v56, 0.0 }
 0x193   : > { %v885_v23 = vpop.f32.mrf.mxu3  ;;  %1209 = vmatmul.f32.gmra.mxu0 %v720_v18 }
 0x194   : > { %v886_v4 = vadd.f32 %v885_v23, %v2539_v11  ;;  %1339 = vmatmul.f32.gmra.mxu1 %v1251_v59  ;;  %v1015_v26 = vpop.f32.mrf.mxu1 }
 0x196   : > { %v951_v63 = vadd.f32 %v950_v20, %v886_v4  ;;  %v2756_v20 = vmax.f32 %v2468_v28, 0.0 }
 0x198   : > { %v1016_v3 = vadd.f32 %v1015_v26, %v951_v63  ;;  %1147 = vmatmul.f32.gmra.mxu3 %v722_v32  ;;  %v953_v31 = vpop.f32.mrf.mxu0  ;;  %v1296_v32 = vld [vmem:[#allocation10 + $0xa8] sm:$0xff]  ;;  %v2757_v26 = vmax.f32 %v2472_v50, 0.0 }
 0x199   : > { %1386 = vmatpush.msra.mxu2 %v1296_v32 }
 0x19a   : > { %v1253_v7 = vmax.f32 %v1016_v3, 0.0 }
 0x19b   : > { %v888_v13 = vpop.f32.mrf.mxu3  ;;  %1212 = vmatmul.f32.gmra.mxu0 %v723_v36 }
 0x19c   : > { %v889_v5 = vadd.f32 %v888_v13, %v2539_v11  ;;  %1342 = vmatmul.f32.gmra.mxu1 %v1253_v7  ;;  %v1018_v62 = vpop.f32.mrf.mxu1  ;;  %v1065_v7 = vpop.f32.mrf.mxu2  ;;  %v1291_v13 = vld [vmem:[#allocation10 + $0x80] sm:$0xff] }
 0x19e   : > { %v954_v12 = vadd.f32 %v953_v31, %v889_v5  ;;  %v2758_v31 = vmax.f32 %v2481_v21, 0.0 }
 0x1a0   : > { %v1019_v18 = vadd.f32 %v1018_v62, %v954_v12  ;;  %1150 = vmatmul.f32.gmra.mxu3 %v725_v49  ;;  %v956_v30 = vpop.f32.mrf.mxu0  ;;  %v1295_v49 = vld [vmem:[#allocation10 + $0xa0] sm:$0xff]  ;;  %v2759_v12 = vmax.f32 %v2485_v43, 0.0 }
 0x1a1   : > { %1387 = vmatpush.msra.mxu2 %v1295_v49 }
 0x1a2   : > { %v1255_v24 = vmax.f32 %v1019_v18, 0.0 }
 0x1a3   : > { %v891_v34 = vpop.f32.mrf.mxu3  ;;  %1215 = vmatmul.f32.gmra.mxu0 %v726_v54 }
 0x1a4   : > { %v892_v60 = vadd.f32 %v891_v34, %v2539_v11  ;;  %1345 = vmatmul.f32.gmra.mxu1 %v1255_v24  ;;  %v1021_v37 = vpop.f32.mrf.mxu1  ;;  %v2760_v24 = vmax.f32 %v2494_v33, 0.0  ;;  %v1068_v34 = vpop.f32.mrf.mxu2  ;;  %v1472_v33 = vld [vmem:[#allocation11 + $0x78] sm:$0xff] }
 0x1a5   : > { %1477 = vmatpush.msra.mxu3 %v1472_v33 }
 0x1a6   : > { %v957_v29 = vadd.f32 %v956_v30, %v892_v60 }
 0x1a8   : > { %v1022_v36 = vadd.f32 %v1021_v37, %v957_v29  ;;  %1153 = vmatmul.f32.gmra.mxu3 %v728_v1  ;;  %v959_v42 = vpop.f32.mrf.mxu0  ;;  %v1294_v1 = vld [vmem:[#allocation10 + $0x98] sm:$0xff]  ;;  %v2761_v29 = vmax.f32 %v2498_v39, 0.0 }
 0x1a9   : > { %1388 = vmatpush.msra.mxu2 %v1294_v1  ;;  %v2764_v1 = vmax.f32 %v2520_v38, 0.0 }
 0x1aa   : > { %v1257_v40 = vmax.f32 %v1022_v36, 0.0 }
 0x1ab   : > { %v894_v51 = vpop.f32.mrf.mxu3  ;;  %1218 = vmatmul.f32.gmra.mxu0 %v729_v8 }
 0x1ac   : > { %v895_v22 = vadd.f32 %v894_v51, %v2539_v11  ;;  %1348 = vmatmul.f32.gmra.mxu1 %v1257_v40  ;;  %v1024_v10 = vpop.f32.mrf.mxu1  ;;  %v2762_v40 = vmax.f32 %v2507_v55, 0.0  ;;  %v1071_v39 = vpop.f32.mrf.mxu2 }
 0x1ae   : > { %v960_v47 = vadd.f32 %v959_v42, %v895_v22 }
 0x1b0   : > { %v1025_v54 = vadd.f32 %v1024_v10, %v960_v47  ;;  %1156 = vmatmul.f32.gmra.mxu3 %v731_v25  ;;  %v962_v41 = vpop.f32.mrf.mxu0  ;;  %v1293_v25 = vld [vmem:[#allocation10 + $0x90] sm:$0xff]  ;;  %v2763_v47 = vmax.f32 %v2511_v44, 0.0 }
 0x1b1   : > { %1389 = vmatpush.msra.mxu2 %v1293_v25 }
 0x1b2   : > { %v1259_v58 = vmax.f32 %v1025_v54, 0.0 }
 0x1b3   : > { %v897_v45 = vpop.f32.mrf.mxu3  ;;  %1221 = vmatmul.f32.gmra.mxu0 %v732_v35  ;;  %1390 = vmatpush.msra.mxu2 %v1292_v0 }
 0x1b4   : > { %v898_v9 = vadd.f32 %v897_v45, %v2539_v11  ;;  %1351 = vmatmul.f32.gmra.mxu1 %v1259_v58  ;;  %v1027_v48 = vpop.f32.mrf.mxu1 }
 0x1b5   : > { %1391 = vmatpush.msra.mxu2 %v1291_v13 }
 0x1b6   : > { %v963_v2 = vadd.f32 %v962_v41, %v898_v9  ;;  %v1471_v9 = vld [vmem:[#allocation11 + $0x70] sm:$0xff] }
 0x1b7   : > { %1478 = vmatpush.msra.mxu3 %v1471_v9 }
 0x1b8   : > { %v1028_v8 = vadd.f32 %v1027_v48, %v963_v2  ;;  %1159 = vmatmul.f32.gmra.mxu3 %v2754_v53  ;;  %v965_v15 = vpop.f32.mrf.mxu0  ;;  %v2620_v53 = vperm.slane %v2532_v57, 1  ;;  %v1469_v57 = vld [vmem:[#allocation11 + $0x60] sm:$0xff] }
 0x1ba   : > { %v1261_v16 = vmax.f32 %v1028_v8, 0.0  ;;  %v2765_v8 = vmax.f32 %v2524_v6, 0.0 }
 0x1bb   : > { %v900_v19 = vpop.f32.mrf.mxu3  ;;  %1224 = vmatmul.f32.gmra.mxu0 %v2755_v52  ;;  %v1470_v52 = vld [vmem:[#allocation11 + $0x68] sm:$0xff] }
 0x1bc   : > { %v901_v17 = vadd.f32 %v900_v19, %v2539_v11  ;;  %1354 = vmatmul.f32.gmra.mxu1 %v1261_v16  ;;  %v1030_v56 = vpop.f32.mrf.mxu1  ;;  %v1074_v16 = vpop.f32.mrf.mxu2  ;;  %v1066_v19 = vadd.f32 %v1065_v7, %v2620_v53  ;;  %1479 = vmatpush.msra.mxu3 %v1470_v52 }
 0x1be   : > { %v966_v27 = vadd.f32 %v965_v15, %v901_v17  ;;  %1480 = vmatpush.msra.mxu3 %v1469_v57 }
 0x1c0   : > { %v1031_v35 = vadd.f32 %v1030_v56, %v966_v27  ;;  %1162 = vmatmul.f32.gmra.mxu3 %v2756_v20  ;;  %v968_v59 = vpop.f32.mrf.mxu0 }
 0x1c2   : > { %v1263_v46 = vmax.f32 %v1031_v35, 0.0 }
 0x1c3   : > { %v903_v23 = vpop.f32.mrf.mxu3  ;;  %1227 = vmatmul.f32.gmra.mxu0 %v2757_v26 }
 0x1c4   : > { %v904_v4 = vadd.f32 %v903_v23, %v2539_v11  ;;  %1357 = vmatmul.f32.gmra.mxu1 %v1263_v46  ;;  %v1033_v63 = vpop.f32.mrf.mxu1  ;;  %v1077_v6 = vpop.f32.mrf.mxu2 }
 0x1c6   : > { %v969_v61 = vadd.f32 %v968_v59, %v904_v4  ;;  %v1069_v59 = vadd.f32 %v1068_v34, %v2620_v53  ;;  %v1466_v34 = vld [vmem:[#allocation11 + $0x48] sm:$0xff] }
 0x1c8   : > { %v1034_v3 = vadd.f32 %v1033_v63, %v969_v61  ;;  %1165 = vmatmul.f32.gmra.mxu3 %v2758_v31  ;;  %v971_v28 = vpop.f32.mrf.mxu0  ;;  %v1072_v63 = vadd.f32 %v1071_v39, %v2620_v53  ;;  %v1468_v61 = vld [vmem:[#allocation11 + $0x58] sm:$0xff] }
 0x1c9   : > { %1481 = vmatpush.msra.mxu3 %v1468_v61  ;;  %v1460_v61 = vld [vmem:[#allocation11 + $0x18] sm:$0xff] }
 0x1ca   : > { %v1265_v14 = vmax.f32 %v1034_v3, 0.0 }
 0x1cb   : > { %v906_v5 = vpop.f32.mrf.mxu3  ;;  %1230 = vmatmul.f32.gmra.mxu0 %v2759_v12 }
 0x1cc   : > { %v907_v62 = vadd.f32 %v906_v5, %v2539_v11  ;;  %1360 = vmatmul.f32.gmra.mxu1 %v1265_v14  ;;  %v1036_v50 = vpop.f32.mrf.mxu1  ;;  %v1080_v3 = vpop.f32.mrf.mxu2  ;;  %v1075_v5 = vadd.f32 %v1074_v16, %v2620_v53 }
 0x1ce   : > { %v972_v18 = vadd.f32 %v971_v28, %v907_v62  ;;  %v1467_v62 = vld [vmem:[#allocation11 + $0x50] sm:$0xff] }
 0x1cf   : > { %1482 = vmatpush.msra.mxu3 %v1467_v62  ;;  %v1459_v62 = vld [vmem:[#allocation11 + $0x10] sm:$0xff] }
 0x1d0   : > { %v1037_v30 = vadd.f32 %v1036_v50, %v972_v18  ;;  %1168 = vmatmul.f32.gmra.mxu3 %v2760_v24  ;;  %v974_v21 = vpop.f32.mrf.mxu0 }
 0x1d1   : > { %1483 = vmatpush.msra.mxu3 %v1466_v34  ;;  %v1457_v34 = vld [vmem:[#allocation11] sm:$0xff] }
 0x1d2   : > { %v1267_v32 = vmax.f32 %v1037_v30, 0.0 }
 0x1d3   : > { %v909_v60 = vpop.f32.mrf.mxu3  ;;  %1233 = vmatmul.f32.gmra.mxu0 %v2761_v29 }
 0x1d4   : > { %v910_v37 = vadd.f32 %v909_v60, %v2539_v11  ;;  %1363 = vmatmul.f32.gmra.mxu1 %v1267_v32  ;;  %v1039_v36 = vpop.f32.mrf.mxu1  ;;  %v1083_v18 = vpop.f32.mrf.mxu2  ;;  %v1078_v32 = vadd.f32 %v1077_v6, %v2620_v53 }
 0x1d5   : > { %v1084_v39 = vadd.f32 %v1083_v18, %v2620_v53 }
 0x1d6   : > { %v975_v42 = vadd.f32 %v974_v21, %v910_v37 }
 0x1d8   : > { %v1040_v43 = vadd.f32 %v1039_v36, %v975_v42  ;;  %1171 = vmatmul.f32.gmra.mxu3 %v2762_v40  ;;  %v977_v49 = vpop.f32.mrf.mxu0  ;;  %v1081_v40 = vadd.f32 %v1080_v3, %v2620_v53 }
 0x1da   : > { %v1269_v51 = vmax.f32 %v1040_v43, 0.0 }
 0x1db   : > { %v912_v22 = vpop.f32.mrf.mxu3  ;;  %1236 = vmatmul.f32.gmra.mxu0 %v2763_v47 }
 0x1dc   : > { %v913_v10 = vadd.f32 %v912_v22, %v2539_v11  ;;  %1366 = vmatmul.f32.gmra.mxu1 %v1269_v51  ;;  %v1042_v54 = vpop.f32.mrf.mxu1  ;;  %v1086_v36 = vpop.f32.mrf.mxu2 }
 0x1de   : > { %v978_v41 = vadd.f32 %v977_v49, %v913_v10  ;;  %v1465_v49 = vld [vmem:[#allocation11 + $0x40] sm:$0xff] }
 0x1df   : > { %1484 = vmatpush.msra.mxu3 %v1465_v49 }
 0x1e0   : > { %v1043_v58 = vadd.f32 %v1042_v54, %v978_v41  ;;  %1174 = vmatmul.f32.gmra.mxu3 %v2764_v1  ;;  %v980_v55 = vpop.f32.mrf.mxu0  ;;  %v1464_v41 = vld [vmem:[#allocation11 + $0x38] sm:$0xff] }
 0x1e1   : > { %1485 = vmatpush.msra.mxu3 %v1464_v41 }
 0x1e2   : > { %v1271_v45 = vmax.f32 %v1043_v58, 0.0 }
 0x1e3   : > { %v915_v48 = vpop.f32.mrf.mxu3  ;;  %1239 = vmatmul.f32.gmra.mxu0 %v2765_v8 }
 0x1e4   : > { %v916_v2 = vadd.f32 %v915_v48, %v2539_v11  ;;  %1369 = vmatmul.f32.gmra.mxu1 %v1271_v45  ;;  %v1045_v44 = vpop.f32.mrf.mxu1  ;;  %v1089_v47 = vpop.f32.mrf.mxu2  ;;  %v1087_v48 = vadd.f32 %v1086_v36, %v2620_v53 }
 0x1e6   : > { %v981_v15 = vadd.f32 %v980_v55, %v916_v2  ;;  %v1463_v2 = vld [vmem:[#allocation11 + $0x30] sm:$0xff] }
 0x1e7   : > { %1486 = vmatpush.msra.mxu3 %v1463_v2 }
 0x1e8   : > { %v1046_v25 = vadd.f32 %v1045_v44, %v981_v15  ;;  %v1195_v38 = vpop.f32.mrf.mxu0 }
 0x1ea   : > { %v1273_v17 = vmax.f32 %v1046_v25, 0.0 }
 0x1eb   : > { %v1130_v56 = vpop.f32.mrf.mxu3 }
 0x1ec   : > { %v1131_v27 = vadd.f32 %v1130_v56, %v1066_v19  ;;  %1372 = vmatmul.f32.gmra.mxu1 %v1273_v17  ;;  %v1092_v8 = vpop.f32.mrf.mxu2  ;;  %v1090_v19 = vadd.f32 %v1089_v47, %v2620_v53  ;;  %v1462_v17 = vld [vmem:[#allocation11 + $0x28] sm:$0xff] }
 0x1ed   : > { %1487 = vmatpush.msra.mxu3 %v1462_v17 }
 0x1ee   : > { %v1196_v11 = vadd.f32 %v1195_v38, %v1131_v27 }
 0x1f0   : > { %v1244_v35 = vmax.f32 %v1196_v11, 0.0  ;;  %v1198_v20 = vpop.f32.mrf.mxu0 }
 0x1f1   : > { %v1328_v49 = vpop.f32.mrf.mxu1 }
 0x1f2   : > { %1392 = vmatmul.f32.vlgmr.msra.gmra.mxu2 %v1244_v35 }
 0x1f3   : > { %v1133_v46 = vpop.f32.mrf.mxu3 }
 0x1f4   : > { %v1134_v0 = vadd.f32 %v1133_v46, %v1069_v59  ;;  %v1095_v27 = vpop.f32.mrf.mxu2  ;;  %v1461_v59 = vld [vmem:[#allocation11 + $0x20] sm:$0xff] }
 0x1f5   : > { %1488 = vmatpush.msra.mxu3 %v1461_v59 }
 0x1f6   : > { %v1199_v23 = vadd.f32 %v1198_v20, %v1134_v0  ;;  %v1093_v20 = vadd.f32 %v1092_v8, %v2620_v53 }
 0x1f7   : > { %1489 = vmatpush.msra.mxu3 %v1460_v61 }
 0x1f8   : > { %v1246_v4 = vmax.f32 %v1199_v23, 0.0  ;;  %v1201_v26 = vpop.f32.mrf.mxu0 }
 0x1f9   : > { %1490 = vmatpush.msra.mxu3 %v1459_v62 }
 0x1fa   : > { %1395 = vmatmul.f32.gmra.mxu2 %v1246_v4 }
 0x1fb   : > { %v1136_v31 = vpop.f32.mrf.mxu3 }
 0x1fc   : > { %v1137_v7 = vadd.f32 %v1136_v31, %v1072_v63  ;;  %v1098_v23 = vpop.f32.mrf.mxu2  ;;  %v1096_v63 = vadd.f32 %v1095_v27, %v2620_v53 }
 0x1fe   : > { %v1202_v28 = vadd.f32 %v1201_v26, %v1137_v7 }
 0x200   : > { %v1248_v14 = vmax.f32 %v1202_v28, 0.0  ;;  %v1204_v13 = vpop.f32.mrf.mxu0 }
 0x202   : > { %1398 = vmatmul.f32.gmra.mxu2 %v1248_v14 }
 0x203   : > { %v1139_v12 = vpop.f32.mrf.mxu3 }
 0x204   : > { %v1140_v50 = vadd.f32 %v1139_v12, %v1075_v5  ;;  %v1101_v14 = vpop.f32.mrf.mxu2  ;;  %v1099_v5 = vadd.f32 %v1098_v23, %v2620_v53 }
 0x206   : > { %v1205_v30 = vadd.f32 %v1204_v13, %v1140_v50 }
 0x208   : > { %v1250_v24 = vmax.f32 %v1205_v30, 0.0  ;;  %v1207_v21 = vpop.f32.mrf.mxu0 }
 0x20a   : > { %1401 = vmatmul.f32.gmra.mxu2 %v1250_v24 }
 0x20b   : > { %v1142_v60 = vpop.f32.mrf.mxu3 }
 0x20c   : > { %v1143_v37 = vadd.f32 %v1142_v60, %v1078_v32  ;;  %v1458_v32 = vld [vmem:[#allocation11 + $0x8] sm:$0xff]  ;;  %v1104_v60 = vpop.f32.mrf.mxu2 }
 0x20d   : > { %1491 = vmatpush.msra.mxu3 %v1458_v32 }
 0x20e   : > { %v1208_v29 = vadd.f32 %v1207_v21, %v1143_v37  ;;  %v1102_v21 = vadd.f32 %v1101_v14, %v2620_v53 }
 0x20f   : > { %1492 = vmatpush.msra.mxu3 %v1457_v34 }
 0x210   : > { %v1252_v42 = vmax.f32 %v1208_v29, 0.0  ;;  %v1210_v43 = vpop.f32.mrf.mxu0 }
 0x212   : > { %1404 = vmatmul.f32.gmra.mxu2 %v1252_v42 }
 0x213   : > { %v1145_v51 = vpop.f32.mrf.mxu3 }
 0x214   : > { %v1146_v33 = vadd.f32 %v1145_v51, %v1081_v40  ;;  %v1105_v40 = vadd.f32 %v1104_v60, %v2620_v53 }
 0x216   : > { %v1211_v22 = vadd.f32 %v1210_v43, %v1146_v33 }
 0x218   : > { %v1254_v10 = vmax.f32 %v1211_v22, 0.0  ;;  %v1213_v54 = vpop.f32.mrf.mxu0  ;;  %v1107_v22 = vpop.f32.mrf.mxu2 }
 0x21a   : > { %1407 = vmatmul.f32.gmra.mxu2 %v1254_v10 }
 0x21b   : > { %v1148_v58 = vpop.f32.mrf.mxu3 }
 0x21c   : > { %v1149_v1 = vadd.f32 %v1148_v58, %v1084_v39 }
 0x21e   : > { %v1214_v55 = vadd.f32 %v1213_v54, %v1149_v1  ;;  %v1108_v54 = vadd.f32 %v1107_v22, %v2620_v53  ;;  %v1331_v1 = vpop.f32.mrf.mxu1 }
 0x220   : > { %v1256_v45 = vmax.f32 %v1214_v55, 0.0  ;;  %v1216_v9 = vpop.f32.mrf.mxu0 }
 0x222   : > { %1410 = vmatmul.f32.gmra.mxu2 %v1256_v45  ;;  %v1110_v45 = vpop.f32.mrf.mxu2 }
 0x223   : > { %v1151_v44 = vpop.f32.mrf.mxu3 }
 0x224   : > { %v1152_v15 = vadd.f32 %v1151_v44, %v1087_v48  ;;  %v1111_v48 = vadd.f32 %v1110_v45, %v2620_v53 }
 0x226   : > { %v1217_v16 = vadd.f32 %v1216_v9, %v1152_v15 }
 0x228   : > { %v1258_v25 = vmax.f32 %v1217_v16, 0.0  ;;  %v1219_v38 = vpop.f32.mrf.mxu0  ;;  %v1334_v16 = vpop.f32.mrf.mxu1 }
 0x22a   : > { %1413 = vmatmul.f32.gmra.mxu2 %v1258_v25 }
 0x22b   : > { %v1154_v52 = vpop.f32.mrf.mxu3 }
 0x22c   : > { %v1155_v56 = vadd.f32 %v1154_v52, %v1090_v19 }
 0x22e   : > { %v1220_v11 = vadd.f32 %v1219_v38, %v1155_v56  ;;  %v2641_v38 = vld [vmem:[%s2722_s6] ss:$0 sm:$0xff] }
 0x22f   : > { %v1329_v17 = vadd.f32 %v2641_v38, %v1328_v49  ;;  %v1335_v59 = vadd.f32 %v2641_v38, %v1334_v16 }
 0x230   : > { %v1260_v35 = vmax.f32 %v1220_v11, 0.0  ;;  %v1222_v6 = vpop.f32.mrf.mxu0  ;;  %v1337_v19 = vpop.f32.mrf.mxu1  ;;  %v1332_v11 = vadd.f32 %v2641_v38, %v1331_v1 }
 0x232   : > { %1416 = vmatmul.f32.gmra.mxu2 %v1260_v35 }
 0x233   : > { %v1157_v57 = vpop.f32.mrf.mxu3 }
 0x234   : > { %v1158_v46 = vadd.f32 %v1157_v57, %v1093_v20 }
 0x236   : > { %v1223_v0 = vadd.f32 %v1222_v6, %v1158_v46 }
 0x238   : > { %v1262_v4 = vmax.f32 %v1223_v0, 0.0  ;;  %v1225_v26 = vpop.f32.mrf.mxu0  ;;  %v1340_v53 = vpop.f32.mrf.mxu1 }
 0x23a   : > { %1419 = vmatmul.f32.gmra.mxu2 %v1262_v4  ;;  %v1338_v4 = vadd.f32 %v2641_v38, %v1337_v19 }
 0x23b   : > { %v1160_v3 = vpop.f32.mrf.mxu3 }
 0x23c   : > { %v1161_v31 = vadd.f32 %v1160_v3, %v1096_v63 }
 0x23e   : > { %v1226_v7 = vadd.f32 %v1225_v26, %v1161_v31  ;;  %v1341_v31 = vadd.f32 %v2641_v38, %v1340_v53 }
 0x240   : > { %v1264_v28 = vmax.f32 %v1226_v7, 0.0  ;;  %v1228_v13 = vpop.f32.mrf.mxu0  ;;  %v1343_v57 = vpop.f32.mrf.mxu1 }
 0x242   : > { %1422 = vmatmul.f32.gmra.mxu2 %v1264_v28 }
 0x243   : > { %v1163_v12 = vpop.f32.mrf.mxu3 }
 0x244   : > { %v1164_v50 = vadd.f32 %v1163_v12, %v1099_v5  ;;  %v1344_v5 = vadd.f32 %v2641_v38, %v1343_v57 }
 0x246   : > { %v1229_v18 = vadd.f32 %v1228_v13, %v1164_v50 }
 0x248   : > { %v1266_v30 = vmax.f32 %v1229_v18, 0.0  ;;  %v1231_v24 = vpop.f32.mrf.mxu0  ;;  %v1346_v61 = vpop.f32.mrf.mxu1 }
 0x24a   : > { %1425 = vmatmul.f32.gmra.mxu2 %v1266_v30  ;;  %v1347_v30 = vadd.f32 %v2641_v38, %v1346_v61 }
 0x24b   : > { %v1166_v37 = vpop.f32.mrf.mxu3 }
 0x24c   : > { %v1167_v29 = vadd.f32 %v1166_v37, %v1102_v21 }
 0x24e   : > { %v1232_v36 = vadd.f32 %v1231_v24, %v1167_v29 }
 0x250   : > { %v1268_v42 = vmax.f32 %v1232_v36, 0.0  ;;  %v1234_v43 = vpop.f32.mrf.mxu0  ;;  %v1349_v13 = vpop.f32.mrf.mxu1 }
 0x251   : > { %v1350_v34 = vadd.f32 %v2641_v38, %v1349_v13 }
 0x252   : > { %1428 = vmatmul.f32.gmra.mxu2 %v1268_v42 }
 0x253   : > { %v1169_v51 = vpop.f32.mrf.mxu3 }
 0x254   : > { %v1170_v33 = vadd.f32 %v1169_v51, %v1105_v40 }
 0x256   : > { %v1235_v10 = vadd.f32 %v1234_v43, %v1170_v33 }
 0x258   : > { %v1270_v47 = vmax.f32 %v1235_v10, 0.0  ;;  %v1237_v41 = vpop.f32.mrf.mxu0  ;;  %v1352_v18 = vpop.f32.mrf.mxu1 }
 0x259   : > { %v1353_v42 = vadd.f32 %v2641_v38, %v1352_v18 }
 0x25a   : > { %1431 = vmatmul.f32.gmra.mxu2 %v1270_v47 }
 0x25b   : > { %v1172_v39 = vpop.f32.mrf.mxu3 }
 0x25c   : > { %v1173_v58 = vadd.f32 %v1172_v39, %v1108_v54 }
 0x25e   : > { %v1238_v55 = vadd.f32 %v1237_v41, %v1173_v58 }
 0x260   : > { %v1272_v9 = vmax.f32 %v1238_v55, 0.0  ;;  %v1240_v44 = vpop.f32.mrf.mxu0  ;;  %v1355_v60 = vpop.f32.mrf.mxu1 }
 0x261   : > { %v1356_v33 = vadd.f32 %v2641_v38, %v1355_v60 }
 0x262   : > { %1434 = vmatmul.f32.gmra.mxu2 %v1272_v9 }
 0x263   : > { %v1175_v2 = vpop.f32.mrf.mxu3 }
 0x264   : > { %v1176_v8 = vadd.f32 %v1175_v2, %v1111_v48 }
 0x266   : > { %v1241_v15 = vadd.f32 %v1240_v44, %v1176_v8 }
 0x268   : > { %v1274_v25 = vmax.f32 %v1241_v15, 0.0  ;;  %v1358_v49 = vpop.f32.mrf.mxu1 }
 0x269   : > { %v1359_v39 = vadd.f32 %v2641_v38, %v1358_v49 }
 0x26a   : > { %1437 = vmatmul.f32.gmra.mxu2 %v1274_v25 }
 0x270   : > { %v1361_v54 = vpop.f32.mrf.mxu1 }
 0x271   : > { %v1362_v45 = vadd.f32 %v2641_v38, %v1361_v54 }
 0x275   : > { %v1393_v52 = vpop.f32.mrf.mxu2 }
 0x276   : > { %v1394_v56 = vadd.f32 %v1393_v52, %v1329_v17 }
 0x278   : > { %v1441_v27 = vmax.f32 %v1394_v56, 0.0  ;;  %v1364_v55 = vpop.f32.mrf.mxu1 }
 0x279   : > { %v1365_v8 = vadd.f32 %v2641_v38, %v1364_v55 }
 0x27a   : > { %1493 = vmatmul.f32.vlgmr.msra.gmra.mxu3 %v1441_v27 }
 0x27d   : > { %v1396_v35 = vpop.f32.mrf.mxu2 }
 0x27e   : > { %v1397_v6 = vadd.f32 %v1396_v35, %v1332_v11 }
 0x280   : > { %v1442_v20 = vmax.f32 %v1397_v6, 0.0  ;;  %v1367_v44 = vpop.f32.mrf.mxu1 }
 0x281   : > { %v1368_v19 = vadd.f32 %v2641_v38, %v1367_v44 }
 0x282   : > { %1496 = vmatmul.f32.gmra.mxu3 %v1442_v20 }
 0x285   : > { %v1399_v46 = vpop.f32.mrf.mxu2 }
 0x286   : > { %v1400_v0 = vadd.f32 %v1399_v46, %v1335_v59 }
 0x288   : > { %v1443_v23 = vmax.f32 %v1400_v0, 0.0  ;;  %v1370_v56 = vpop.f32.mrf.mxu1 }
 0x289   : > { %v1371_v53 = vadd.f32 %v2641_v38, %v1370_v56 }
 0x28a   : > { %1499 = vmatmul.f32.gmra.mxu3 %v1443_v23  ;;  %v1827_v23 = vld [vmem:[%s2724_s8] ss:$0 sm:$0xff] }
 0x28d   : > { %v1402_v26 = vpop.f32.mrf.mxu2 }
 0x28e   : > { %v1403_v63 = vadd.f32 %v1402_v26, %v1338_v4 }
 0x290   : > { %v1444_v3 = vmax.f32 %v1403_v63, 0.0  ;;  %v1373_v20 = vpop.f32.mrf.mxu1 }
 0x291   : > { %v1374_v59 = vadd.f32 %v2641_v38, %v1373_v20 }
 0x292   : > { %1502 = vmatmul.f32.gmra.mxu3 %v1444_v3 }
 0x295   : > { %v1405_v7 = vpop.f32.mrf.mxu2 }
 0x296   : > { %v1406_v28 = vadd.f32 %v1405_v7, %v1341_v31 }
 0x298   : > { %v1445_v14 = vmax.f32 %v1406_v28, 0.0 }
 0x29a   : > { %1505 = vmatmul.f32.gmra.mxu3 %v1445_v14 }
 0x29d   : > { %v1408_v62 = vpop.f32.mrf.mxu2 }
 0x29e   : > { %v1409_v12 = vadd.f32 %v1408_v62, %v1344_v5 }
 0x2a0   : > { %v1446_v50 = vmax.f32 %v1409_v12, 0.0 }
 0x2a2   : > { %1508 = vmatmul.f32.gmra.mxu3 %v1446_v50 }
 0x2a5   : > { %v1411_v24 = vpop.f32.mrf.mxu2 }
 0x2a6   : > { %v1412_v21 = vadd.f32 %v1411_v24, %v1347_v30 }
 0x2a8   : > { %v1447_v32 = vmax.f32 %v1412_v21, 0.0 }
 0x2aa   : > { %1511 = vmatmul.f32.gmra.mxu3 %v1447_v32 }
 0x2ad   : > { %v1414_v37 = vpop.f32.mrf.mxu2 }
 0x2ae   : > { %v1415_v29 = vadd.f32 %v1414_v37, %v1350_v34 }
 0x2b0   : > { %v1448_v36 = vmax.f32 %v1415_v29, 0.0 }
 0x2b2   : > { %1514 = vmatmul.f32.gmra.mxu3 %v1448_v36 }
 0x2b5   : > { %v1417_v43 = vpop.f32.mrf.mxu2 }
 0x2b6   : > { %v1418_v40 = vadd.f32 %v1417_v43, %v1353_v42 }
 0x2b8   : > { %v1449_v51 = vmax.f32 %v1418_v40, 0.0 }
 0x2ba   : > { %1517 = vmatmul.f32.gmra.mxu3 %v1449_v51 }
 0x2bd   : > { %v1420_v22 = vpop.f32.mrf.mxu2 }
 0x2be   : > { %v1421_v10 = vadd.f32 %v1420_v22, %v1356_v33 }
 0x2c0   : > { %v1450_v47 = vmax.f32 %v1421_v10, 0.0 }
 0x2c2   : > { %1520 = vmatmul.f32.gmra.mxu3 %v1450_v47 }
 0x2c5   : > { %v1423_v41 = vpop.f32.mrf.mxu2 }
 0x2c6   : > { %v1424_v58 = vadd.f32 %v1423_v41, %v1359_v39 }
 0x2c8   : > { %v1451_v1 = vmax.f32 %v1424_v58, 0.0 }
 0x2ca   : > { %1523 = vmatmul.f32.gmra.mxu3 %v1451_v1 }
 0x2cd   : > { %v1426_v9 = vpop.f32.mrf.mxu2 }
 0x2ce   : > { %v1427_v48 = vadd.f32 %v1426_v9, %v1362_v45 }
 0x2d0   : > { %v1452_v2 = vmax.f32 %v1427_v48, 0.0 }
 0x2d2   : > { %1526 = vmatmul.f32.gmra.mxu3 %v1452_v2 }
 0x2d5   : > { %v1429_v15 = vpop.f32.mrf.mxu2 }
 0x2d6   : > { %v1430_v16 = vadd.f32 %v1429_v15, %v1365_v8 }
 0x2d8   : > { %v1453_v25 = vmax.f32 %v1430_v16, 0.0 }
 0x2da   : > { %1529 = vmatmul.f32.gmra.mxu3 %v1453_v25 }
 0x2dd   : > { %v1432_v17 = vpop.f32.mrf.mxu2 }
 0x2de   : > { %v1433_v52 = vadd.f32 %v1432_v17, %v1368_v19 }
 0x2e0   : > { %v1454_v27 = vmax.f32 %v1433_v52, 0.0 }
 0x2e2   : > { %1532 = vmatmul.f32.gmra.mxu3 %v1454_v27 }
 0x2e5   : > { %v1435_v11 = vpop.f32.mrf.mxu2 }
 0x2e6   : > { %v1436_v35 = vadd.f32 %v1435_v11, %v1371_v53 }
 0x2e8   : > { %v1455_v6 = vmax.f32 %v1436_v35, 0.0 }
 0x2ea   : > { %1535 = vmatmul.f32.gmra.mxu3 %v1455_v6 }
 0x2ed   : > { %v1438_v57 = vpop.f32.mrf.mxu2 }
 0x2ee   : > { %v1439_v46 = vadd.f32 %v1438_v57, %v1374_v59 }
 0x2f0   : > { %v1456_v0 = vmax.f32 %v1439_v46, 0.0 }
 0x2f2   : > { %1538 = vmatmul.f32.gmra.mxu3 %v1456_v0 }
 0x2fd   : > { %v1494_v4 = vpop.f32.mrf.mxu3 }
 0x2fe   : > { %v1495_v26 = vadd.f32 %v1827_v23, %v1494_v4 }
 0x300   : > { %1542 = vst [vmem:[%s2664_s1] sm:$0xff] %v1495_v26 }
 0x305   : > { %v1497_v38 = vpop.f32.mrf.mxu3 }
 0x306   : > { %v1498_v63 = vadd.f32 %v1827_v23, %v1497_v38 }
 0x308   : > { %1543 = vst [vmem:[%s2664_s1 + $0x8] sm:$0xff] %v1498_v63 }
 0x30d   : > { %v1500_v61 = vpop.f32.mrf.mxu3 }
 0x30e   : > { %v1501_v3 = vadd.f32 %v1827_v23, %v1500_v61 }
 0x310   : > { %1544 = vst [vmem:[%s2664_s1 + $0x10] sm:$0xff] %v1501_v3 }
 0x315   : > { %v1503_v31 = vpop.f32.mrf.mxu3 }
 0x316   : > { %v1504_v7 = vadd.f32 %v1827_v23, %v1503_v31 }
 0x318   : > { %1545 = vst [vmem:[%s2664_s1 + $0x18] sm:$0xff] %v1504_v7 }
 0x31d   : > { %v1506_v28 = vpop.f32.mrf.mxu3 }
 0x31e   : > { %v1507_v14 = vadd.f32 %v1827_v23, %v1506_v28 }
 0x320   : > { %1546 = vst [vmem:[%s2664_s1 + $0x20] sm:$0xff] %v1507_v14 }
 0x325   : > { %v1509_v13 = vpop.f32.mrf.mxu3 }
 0x326   : > { %v1510_v5 = vadd.f32 %v1827_v23, %v1509_v13 }
 0x328   : > { %1547 = vst [vmem:[%s2664_s1 + $0x28] sm:$0xff] %v1510_v5 }
 0x32d   : > { %v1512_v62 = vpop.f32.mrf.mxu3 }
 0x32e   : > { %v1513_v12 = vadd.f32 %v1827_v23, %v1512_v62 }
 0x330   : > { %1548 = vst [vmem:[%s2664_s1 + $0x30] sm:$0xff] %v1513_v12 }
 0x335   : > { %v1515_v50 = vpop.f32.mrf.mxu3 }
 0x336   : > { %v1516_v18 = vadd.f32 %v1827_v23, %v1515_v50 }
 0x338   : > { %1549 = vst [vmem:[%s2664_s1 + $0x38] sm:$0xff] %v1516_v18 }
 0x33d   : > { %v1518_v30 = vpop.f32.mrf.mxu3 }
 0x33e   : > { %v1519_v24 = vadd.f32 %v1827_v23, %v1518_v30 }
 0x340   : > { %1550 = vst [vmem:[%s2664_s1 + $0x40] sm:$0xff] %v1519_v24 }
 0x345   : > { %v1521_v21 = vpop.f32.mrf.mxu3 }
 0x346   : > { %v1522_v32 = vadd.f32 %v1827_v23, %v1521_v21 }
 0x348   : > { %1551 = vst [vmem:[%s2664_s1 + $0x48] sm:$0xff] %v1522_v32 }
 0x34d   : > { %v1524_v34 = vpop.f32.mrf.mxu3 }
 0x34e   : > { %v1525_v60 = vadd.f32 %v1827_v23, %v1524_v34 }
 0x350   : > { %1552 = vst [vmem:[%s2664_s1 + $0x50] sm:$0xff] %v1525_v60 }
 0x355   : > { %v1527_v37 = vpop.f32.mrf.mxu3 }
 0x356   : > { %v1528_v29 = vadd.f32 %v1827_v23, %v1527_v37 }
 0x358   : > { %1553 = vst [vmem:[%s2664_s1 + $0x58] sm:$0xff] %v1528_v29 }
 0x35d   : > { %v1530_v36 = vpop.f32.mrf.mxu3 }
 0x35e   : > { %v1531_v42 = vadd.f32 %v1827_v23, %v1530_v36 }
 0x360   : > { %1554 = vst [vmem:[%s2664_s1 + $0x60] sm:$0xff] %v1531_v42 }
 0x365   : > { %v1533_v43 = vpop.f32.mrf.mxu3 }
 0x366   : > { %v1534_v40 = vadd.f32 %v1827_v23, %v1533_v43 }
 0x368   : > { %1555 = vst [vmem:[%s2664_s1 + $0x68] sm:$0xff] %v1534_v40 }
 0x36d   : > { %v1536_v49 = vpop.f32.mrf.mxu3 }
 0x36e   : > { %v1537_v51 = vadd.f32 %v1827_v23, %v1536_v49 }
 0x370   : > { %1556 = vst [vmem:[%s2664_s1 + $0x70] sm:$0xff] %v1537_v51 }
 0x375   : > { %v1539_v33 = vpop.f32.mrf.mxu3 }
 0x376   : > { %v1540_v22 = vadd.f32 %v1827_v23, %v1539_v33 }
 0x378   : > { %1557 = vst [vmem:[%s2664_s1 + $0x78] sm:$0xff] %v1540_v22 }
 0x379   : > { %2035 = shalt.err (!%p2032_p9)
}
 0x37a   : > { %s2099_s27 = smov 128   ;;  %s2100_s1 = smov 8  }
 0x37b   : > { %1743 = dma.vmem_to_hbm [thread:$0]  (%p2243_p13), %s1572_s2, 2048, %s1574_s3, %s1559_s28, %s2099_s27, %s2099_s27, %s2100_s1  }
 0x37c PF: > { %s1588_s29 = sand.u32 1, %s2074_s30   ;;  %p2766_p10 = scmp.ge.s32.totalorder %s2086_s12, 2 }
 0x37d   : > { %s1589_s13 = scalar_lea.sflag [#allocation4], %s1588_s29 }
 0x37e   : > { %p1766_p11 = pnand %p2766_p10, %p2248_p4 }
 0x380   : > { %p1767_p0 = pneg %p1766_p11 }
 0x382   : > { %2069 = dma.done.wait (%p1767_p0), %s1589_s13, 2048  }
 0x383   : > { %2071 = vsyncadd (%p1767_p0), %s1589_s13, 4294965248  ;;  %p25_p2 = scmp.ge.s32.totalorder %s2223_s18, 4   ;;  %s2767_s30 = smov %s2078_s10 }
 0x384   : > { %s2768_s10 = smov %s2082_s11  ;;  %s2769_s11 = smov %s2235_s24 }
 0x385   : > { %s2770_s12 = smov %s2223_s18  ;;  %27 = sbr.rel (!%p25_p2) target bundleno = 12 (0xc), region = 121 }
 0x38a   :  { %1595 = vsyncpa [#allocation3], 1 }
 0x38b   :  { %1597 = vsyncpa [#allocation3 + $0x1], 1 }
 0x38c   :  { %1598 = vsyncpa [#allocation6], 1 }
 0x38d   :  { %1599 = vsyncpa [#allocation9], 1 }
 0x38e   :  { %1600 = vsyncpa [#allocation12], 1 }
 0x38f   :  { %1601 = vsyncpa [#allocation4], 1 }
 0x390   :  { %1603 = vsyncpa [#allocation4 + $0x1], 1 }

</bundles_post_ra>
